<compile_context>
chip_gen: v7x
topology: tpu7x:2x2x1
jax: 0.10.0
libtpu: 0.0.40
codegen_flags: <defaults>
</compile_context>

<pallas_src>
import functools
import math

import jax
import jax.numpy as jnp
from jax.experimental import pallas as pl
from jax.experimental.pallas import tpu as pltpu


_LANE = 128
_TINY_BYPASS_BYTES = 64 * 1024        # below this, let XLA fuse the permute
_BLOCK_BUDGET_BYTES = 1 << 20         # ~1 MiB per array per block (v5e-safe)
_PIPELINE_MIN_BYTES = 512 * 1024      # above this, insist on >= 2 grid steps
_GENERIC_MAX_BYTES = 4 << 20          # single-block generic fallback guard


def _cdiv(a, b):
    return -(-a // b)


def _round_up(a, b):
    return _cdiv(a, b) * b


def _channels_last_kernel(x_ref, o_ref):
    # x_ref: (bb, C, mt)   lane-dense load (mt is a multiple of 128 or == M)
    # o_ref: (bb, 1, mt*C) lane-dense store (unmasked vst for interior blocks)
    x = x_ref[...]
    y = jnp.transpose(x, (0, 2, 1))    # single minor-dim (XLU) relayout
    # TODO(synk): on v7x, check the Mosaic dump that transpose+reshape lowers
    # to one relayout; if a lane-sparse (bb, mt, C) intermediate materializes,
    # rewrite as C unrolled strided stores
    # (o_ref[:, 0, pl.ds(c, mt, stride=C)] = x_ref[:, c, :]) to move the
    # interleave off the XLU.
    o_ref[...] = y.reshape(o_ref.shape)


def _generic_permute_kernel(x_ref, o_ref, *, dims):
    # Fallback: whole array in one VMEM block, permute on-chip.
    o_ref[...] = jnp.transpose(x_ref[...], dims)


def _choose_tiles(B, C, M, itemsize, total_bytes):
    """Pick (bb, mt): ~<=1 MiB blocks, lane-dense, pipeline/megacore friendly."""
    budget = _BLOCK_BUDGET_BYTES

    # M tile: full M if a single-batch slab fits, else the largest multiple of
    # 128 that fits the budget (at least 128).
    if C * M * itemsize <= budget:
        mt = M
    else:
        mt = (budget // (C * itemsize)) // _LANE * _LANE
        mt = int(min(max(mt, _LANE), M))

    per_batch_block_bytes = C * mt * itemsize
    bb = int(max(1, min(B, budget // max(per_batch_block_bytes, 1))))

    # Keep >= 2 steps on the "parallel" batch axis whenever possible so both
    # v7x TensorCores (each driving ~half the HBM bandwidth) are used.
    if B >= 2:
        bb = min(bb, _cdiv(B, 2))

    # Mid/large problems must have >= 2 total grid steps so the auto-pipeline
    # can overlap in-DMA, relayout and out-DMA.
    if total_bytes > _PIPELINE_MIN_BYTES and _cdiv(B, bb) * _cdiv(M, mt) < 2:
        if M > _LANE:
            mt = int(min(M, max(_LANE, _round_up(_cdiv(M, 2), _LANE))))
    return bb, mt


def pallas_permute(x, dims, *, min_pallas_bytes=_TINY_BYPASS_BYTES):
    """Equivalent of torch.Tensor.permute(*dims), backed by a Pallas TPU kernel."""
    dims = tuple(int(d) for d in dims)
    ndim = x.ndim
    assert sorted(dims) == list(range(ndim)), "dims must be a permutation"
    out_shape = tuple(x.shape[d] for d in dims)

    # Identity permutation: nothing to do.
    if dims == tuple(range(ndim)):
        return x

    itemsize = jnp.dtype(x.dtype).itemsize
    total_bytes = int(x.size) * itemsize

    # Tiny tensors: a standalone kernel is pure launch + DMA overhead; let XLA
    # handle (and fuse) the permute.
    # TODO(synk): if this permute feeds/follows another Pallas op, fold it into
    # that op's BlockSpec index_map instead of running a standalone kernel.
    if total_bytes <= min_pallas_bytes:
        return jnp.transpose(x, dims)

    # Fast path: "channels-last" style permute (0, 2, ..., n-1, 1),
    # e.g. NCHW -> NHWC.  Both DMA directions move lane-dense slabs; the
    # permute itself is one on-chip (C, mt) -> (mt, C) relayout per block.
    if ndim >= 3 and dims == (0,) + tuple(range(2, ndim)) + (1,):
        B, C = x.shape[0], x.shape[1]
        M = math.prod(x.shape[2:])
        if B > 0 and C > 0 and M > 0:
            x2 = jnp.reshape(x, (B, C, M))           # pure row-major view
            bb, mt = _choose_tiles(B, C, M, itemsize, total_bytes)
            grid = (_cdiv(B, bb), _cdiv(M, mt))

            block_bytes = bb * C * mt * itemsize
            # in + out blocks, double buffered, plus slack for the relayout temp.
            vmem_limit = int(min(64 << 20, max(8 << 20, 6 * block_bytes)))
            cost = pl.CostEstimate(flops=0, transcendentals=0,
                                   bytes_accessed=2 * total_bytes)

            flat = pl.pallas_call(
                _channels_last_kernel,
                out_shape=jax.ShapeDtypeStruct((B, 1, M * C), x.dtype),
                grid=grid,
                # TODO(synk): sweep pipeline_mode=pl.Buffered(3) on the input
                # spec for long grids (pure-copy kernel: a third buffer can
                # hide output-writeback latency).
                in_specs=[pl.BlockSpec((bb, C, mt), lambda i, j: (i, 0, j))],
                out_specs=pl.BlockSpec((bb, 1, mt * C), lambda i, j: (i, 0, j)),
                compiler_params=pltpu.CompilerParams(
                    dimension_semantics=("parallel", "parallel"),
                    vmem_limit_bytes=vmem_limit,
                ),
                cost_estimate=cost,
            )(x2)
            return jnp.reshape(flat, out_shape)

    # Generic fallback for arbitrary permutations: whole array in one VMEM
    # block (block dims == full array dims -> (8, 128) rule satisfied).
    if total_bytes > _GENERIC_MAX_BYTES:
        # TODO(synk): tile the leading non-permuted axes for a Pallas version
        # of large generic permutes instead of delegating to XLA.
        return jnp.transpose(x, dims)

    kernel = functools.partial(_generic_permute_kernel, dims=dims)
    return pl.pallas_call(
        kernel,
        out_shape=jax.ShapeDtypeStruct(out_shape, x.dtype),
        compiler_params=pltpu.CompilerParams(
            vmem_limit_bytes=int(min(64 << 20, max(8 << 20, 6 * total_bytes)))),
        cost_estimate=pl.CostEstimate(flops=0, transcendentals=0,
                                      bytes_accessed=2 * total_bytes),
    )(x)


if __name__ == "__main__":
    # SimplePermuteModule(0, 2, 3, 1) applied to an NCHW tensor.
    dims = (0, 2, 3, 1)
    key = jax.random.PRNGKey(0)

    # Small spec-sized input (8 KiB).  Force the Pallas path (the default
    # tiny-tensor bypass would otherwise delegate to XLA).
    x = jax.random.normal(key, (2, 4, 16, 16), dtype=jnp.float32)
    out = jax.block_until_ready(pallas_permute(x, dims, min_pallas_bytes=0))
    ref = jnp.transpose(x, dims)
    assert out.shape == ref.shape, (out.shape, ref.shape)
    assert out.dtype == ref.dtype
    assert jnp.array_equal(out, ref), "permute mismatch vs reference (small)"

    # Moderately larger input to exercise the multi-step pipelined grid path.
    x2 = jax.random.normal(key, (8, 16, 32, 64), dtype=jnp.float32)
    out2 = jax.block_until_ready(pallas_permute(x2, dims, min_pallas_bytes=0))
    ref2 = jnp.transpose(x2, dims)
    assert out2.shape == ref2.shape, (out2.shape, ref2.shape)
    assert jnp.array_equal(out2, ref2), "permute mismatch vs reference (tiled)"

    print("KERNEL_OK")
</pallas_src>

<mosaic_0001>
module attributes {stable_mosaic.version = 11 : i64} {
  func.func @_channels_last_kernel(%arg0: i32, %arg1: i32, %arg2: memref<1x4x256xf32, #tpu.memory_space<vmem>>, %arg3: memref<1x1x1024xf32, #tpu.memory_space<vmem>>) attributes {dimension_semantics = [#tpu.dimension_semantics<parallel>, #tpu.dimension_semantics<parallel>], iteration_bounds = array<i64: 2, 1>, scalar_prefetch = 0 : i64, scratch_operands = 0 : i64, tpu.core_type = #tpu.core_type<tc>, window_params = [{transform_indices = @transform_0, window_bounds = array<i64: 1, 4, 256>}, {transform_indices = @transform_1, window_bounds = array<i64: 1, 1, 1024>}]} {
    %c0 = arith.constant 0 : index
    %c0_0 = arith.constant 0 : index
    %c0_1 = arith.constant 0 : index
    %0 = vector.load %arg2[%c0, %c0_0, %c0_1] : memref<1x4x256xf32, #tpu.memory_space<vmem>>, vector<1x4x256xf32>
    %1 = tpu.transpose %0, [0, 2, 1] : vector<1x4x256xf32> -> vector<1x256x4xf32>
    %2 = vector.shape_cast %1 : vector<1x256x4xf32> to vector<1x1x1024xf32>
    %c0_2 = arith.constant 0 : index
    %c0_3 = arith.constant 0 : index
    %c0_4 = arith.constant 0 : index
    %3 = vector.load %arg3[%c0_2, %c0_3, %c0_4] : memref<1x1x1024xf32, #tpu.memory_space<vmem>>, vector<1x1x1024xf32>
    tpu.vector_store %arg3[%c0_2, %c0_3, %c0_4], %2 {strides = array<i32>} : memref<1x1x1024xf32, #tpu.memory_space<vmem>>, vector<1x1x1024xf32>,
    return
  }
  func.func @transform_0(%arg0: i32, %arg1: i32) -> (i32, i32, i32) {
    %c0_i32 = arith.constant 0 : i32
    %c0_i32_0 = arith.constant 0 : i32
    return %arg0, %c0_i32, %arg1 : i32, i32, i32
  }
  func.func @transform_1(%arg0: i32, %arg1: i32) -> (i32, i32, i32) {
    %c0_i32 = arith.constant 0 : i32
    %c0_i32_0 = arith.constant 0 : i32
    return %arg0, %c0_i32, %arg1 : i32, i32, i32
  }
}

</mosaic_0001>

<bundles_post_ra>
// kernel: tpu_custom_call.1
= control target key start
LH: loop header
LB: loop body
LE: loop exit
PB: predicated region body
PF: predicated region fallthrough
CT: control target
= control target key end

     0   :  { %s5665_s0 = inlined_call_operand.hbm [shape: f32[2,4,256], index: 0, kind: input, shape index: {}]   ;;  %s5666_s1 = inlined_call_operand.hbm [shape: f32[2,1,1024], index: 1, kind: output, shape index: {}]  }
   0x1   :  { %5771 = sst [smem:[#allocation136_spill]] %s5665_s0 }
   0x2   :  { %5772 = sst [smem:[#allocation137_spill]] %s5666_s1 }
   0x3   :  { %6 = vsyncpa [#allocation3], 0 }
   0x4   :  { %8 = vsyncpa [#allocation3 + $0x1], 0 }
   0x5   :  { %9 = vsyncpa [#allocation4], 0 }
   0x6   :  { %11 = vsyncpa [#allocation4 + $0x1], 0  ;;  %s3496_s6 = smov 0   ;;  %s3498_s7 = smov 0  }
   0x7   :  { %s3500_s8 = smov 0   ;;  %s3502_s9 = smov 0  }
   0x8   :  { %s3504_s10 = smov 0   ;;  %s3506_s11 = smov 0  }
   0x9 LB: > { %5773 = sst [smem:[#allocation8_spill]] %s3427_s6  ;;  %s3220_s12 = sadd.s32 4294967295, %s3447_s11   ;;  %s3447_s11 = sphi %s3506_s11, %s17_s11   ;;  %s3443_s10 = sphi %s3504_s10, %s6196_s10   ;;  %s3439_s9 = sphi %s3502_s9, %s6195_s9   ;;  %s3435_s8 = sphi %s3500_s8, %s6194_s8   ;;  %s3431_s7 = sphi %s3498_s7, %s6193_s7   ;;  %s3427_s6 = sphi %s3496_s6, %s6192_s6  }
   0xa   : > { %5774 = sst [smem:[#allocation9_spill]] %s3431_s7  ;;  %s3221_s13 = sadd.s32 4294967294, %s3447_s11  }
   0xb   : > { %5775 = sst [smem:[#allocation10_spill]] %s3435_s8  ;;  %s29_s14 = sadd.s32 1, %s3443_s10 }
   0xc   : > { %5776 = sst [smem:[#allocation11_spill]] %s3439_s9  ;;  %s38_s15 = sadd.s32 1, %s3435_s8 }
   0xd   : > { %5777 = sst [smem:[#allocation12_spill]] %s3443_s10  ;;  %p31_p0 = scmp.ge.s32.totalorder %s29_s14, 2 }
   0xe   : > { %5778 = sst [smem:[#allocation13_spill]] %s3447_s11  ;;  %p45_p1 = scmp.ne.s32.totalorder %s3435_s8, %s3431_s7 }
   0xf   : > { %p46_p2 = scmp.eq.s32.totalorder %s3447_s11, 0  ;;  %p51_p3 = scmp.ne.s32.totalorder %s3431_s7, %s3427_s6 }
  0x10   : > { %s6198_s14 = smov (%p31_p0, %s29_s14), 0  ;;  %p52_p5 = scmp.eq.s32.totalorder %s3220_s12, 0 }
  0x11   : > { %5779 = sst [smem:[#allocation14_spill]] %s6198_s14  ;;  %p3537_p4 = por %p46_p2, %p45_p1 }
  0x12   : > { %s33_s17 = ssub.s32 %s3443_s10, %s6198_s14  ;;  %p77_p6 = scmp.eq.s32.totalorder %s3220_s12, 1 }
  0x13   : > { %p36_p7 = scmp.eq.s32.totalorder %s33_s17, 0  ;;  %p3543_p8 = por %p52_p5, %p51_p3 }
  0x14   : > { %p3547_p9 = por %p77_p6, %p45_p1  ;;  %p83_p10 = scmp.eq.s32.totalorder %s3221_s13, 1 }
  0x15   : > { %s3552_s20 = scalar_select %p36_p7, %s3435_s8, %s38_s15  }
  0x16   : > { %s5782_s19 = scalar_select %p3547_p9, 1, 0 }
  0x17   : > { %5784 = sst [smem:[#allocation16_spill]] %s3552_s20  ;;  %p3554_p11 = por %p83_p10, %p51_p3 }
  0x18   : > { %5783 = sst [smem:[#allocation15_spill]] %s5782_s19  ;;  %p3249_p13 = scmp.lt.s32.totalorder %s3447_s11, 2 }
  0x19   : > { %s5785_s21 = scalar_select %p3554_p11, 1, 0 }
  0x1a   : > { %s103_s22 = sand.u32 1, %s3435_s8   ;;  %s3235_s24 = sshll.u32 %s3443_s10, 7 }
  0x1b   : > { %5786 = sst [smem:[#allocation17_spill]] %s5785_s21  ;;  %s3224_s23 = sshll.u32 %s103_s22, 3 }
  0x1c   : > { %s5787_s0 = sld [smem:[#allocation136_spill]]  ;;  %s107_s28 = scalar_lea.vmem [#allocation2], %s3224_s23 }
  0x1d   : > { %s117_s29 = sshll.u32 %s107_s28, 4  ;;  %p3571_p0 = pnand %p3249_p13, %p3537_p4  ;;  %s3567_s29 = int_to_ptr.vmem [resolvable:$true] %s117_s29 }
  0x1e   : > { %s104_s2 = scalar_lea.sflag [#allocation3], %s103_s22 }
  0x1f   : > { %p3337_p5 = pneg %p3571_p0 }
  0x22   : > { %s3565_s27 = scalar_lea.hbm %s5787_s0, %s3235_s24  ;;  %s3340_s12 = scalar_lea.hbm %s5787_s0, 256 }
  0x23   : > { %s3335_s3 = scalar_lea.hbm %s3565_s27, 128  ;;  %p3341_p4 = scmp.lt.u32.totalorder %s3565_s27, %s5787_s0 }
  0x24   : > { %p3336_p3 = scmp.ne.s32.totalorder %s3565_s27, %s3335_s3  ;;  %p3342_p10 = scmp.lt.u32.totalorder %s3340_s12, %s3335_s3 }
  0x25   : > { %p3344_p12 = scmp.lt.u32.totalorder %s3335_s3, %s3565_s27 }
  0x26   : > { %p3338_p6 = pnand %p3337_p5, %p3336_p3  ;;  %p3343_p13 = por %p3342_p10, %p3341_p4 }
  0x28   : > { %p3339_p7 = pneg %p3338_p6  ;;  %p3345_p1 = por %p3344_p12, %p3343_p13 }
  0x2a   : > { %p3346_p2 = pnand %p3345_p1, %p3339_p7 }
  0x2c   : > { %3349 = shalt.err (!%p3346_p2)
}
  0x2d   : > { %s3350_s16 = scalar_lea.vmem %s3567_s29, 128  ;;  %s3449_s17 = smov [#allocation2]  }
  0x2e   : > { %p3351_p3 = scmp.ne.s32.totalorder %s3567_s29, %s3350_s16  ;;  %s3355_s22 = sshll.u32 %s3449_s17, 4  ;;  %s3356_s22 = int_to_ptr.vmem [resolvable:$false] %s3355_s22 }
  0x2f   : > { %s3357_s23 = scalar_lea.vmem %s3356_s22, 256  ;;  %p3358_p9 = scmp.lt.s32.totalorder %s3567_s29, %s3356_s22 }
  0x30   : > { %p3353_p6 = pnand %p3351_p3, %p3337_p5  ;;  %p3359_p4 = scmp.lt.s32.totalorder %s3357_s23, %s3350_s16 }
  0x32   : > { %p3354_p11 = pneg %p3353_p6  ;;  %p3360_p10 = por %p3359_p4, %p3358_p9 }
  0x34   : > { %p3361_p12 = pnand %p3360_p10, %p3354_p11 }
  0x36   : > { %3364 = shalt.err (!%p3361_p12)
}
  0x37   : > { %3244 = dma.hbm_to_vmem [thread:$0]  (!%p3571_p0), %s3565_s27, 128, %s3567_s29, %s104_s2  }
  0x38   : > { %p5789_p1 = scmp.lt.s32.totalorder %s3447_s11, 3  ;;  %p5790_p2 = scmp.ge.s32.totalorder %s3447_s11, 1 }
  0x3a   : > { %p123_p5 = pnand %p5790_p2, %p5789_p1 }
  0x3c   : > { %126 = sbr.rel (%p123_p5) target bundleno = 919 (0x397), region = 24 }
  0x43   : > { %s3607_s24 = sand.u32 1, %s3431_s7  }
  0x44   : > { %5791 = sst [smem:[#allocation18_spill]] %s3607_s24  ;;  %s5668_s25 = sshll.u32 %s3607_s24, 3 }
  0x45   : > { %s129_s26 = scalar_lea.sflag [#allocation3], %s3607_s24  ;;  %s132_s28 = scalar_lea.vmem [#allocation2], %s5668_s25 }
  0x46   : > { %3418 = dma.done.wait (%p3543_p8), %s129_s26, 128  }
  0x47   : > { %3420 = vsyncadd (%p3543_p8), %s129_s26, 4294967168  ;;  %v153_v0 = vld [vmem:[%s132_s28] sm:$0xff]  ;;  %v3450_v2 = vmov 1983009808   ;;  %v225_v4 = vlaneseq  ;;  %v3451_v5 = vmov 1934713408  }
  0x48   : > { %157 = vxpose.xlu0.b32.start.end [1/1] (short) %v153_v0, 128  ;;  %v155_v1 = vcombine.high %v153_v0, %v153_v0  ;;  %v223_v3 = vunpack.c.l.s4 %v3450_v2  ;;  %v238_v6 = vunpack.c.l.s4 %v3451_v5  ;;  %v5731_v16 = vmov 0.0   ;;  %s5683_s18 = smov 4   ;;  %s5709_s27 = smov 8  }
  0x49   : > { %v3617_v8 = vshrl.u32 %v225_v4, 7  ;;  %s5704_s29 = smov 16   ;;  %s5679_s30 = smov 12   ;;  %vm2781_vm0 = vcmask 31744   ;;  %vm2783_vm1 = vcmask 64512   ;;  %vm2785_vm2 = vcmask 97280  }
  0x4a   : > { %v224_v7 = vunpack.c.0.s8 %v223_v3  ;;  %v239_v9 = vunpack.c.0.s8 %v238_v6  ;;  %s5677_s2 = smov 20   ;;  %s5707_s3 = smov 24   ;;  %vm2787_vm3 = vcmask 130048   ;;  %vm2789_vm4 = vcmask 162816  }
  0x4b   : > { %5792 = vst [vmem:[#allocation19_spill] sm:$0xff] %v3617_v8  ;;  %s5712_s4 = smov 32   ;;  %s5725_s5 = smov 72   ;;  %vm2791_vm5 = vcmask 195584   ;;  %vm2793_vm6 = vcmask 228352   ;;  %vm5767_vm7 = vcmask 261120  }
  0x4c   : > { %v3620_v10 = vsub.s32 %v224_v7, %v3617_v8  ;;  %v3623_v11 = vsub.s32 %v239_v9, %v3617_v8  ;;  %s5675_s12 = smov 28   ;;  %s5673_s13 = smov 52   ;;  %vm5769_vm8 = vcmask 293888   ;;  %vm5768_vm9 = vcmask 326656  }
  0x4d   : > { %s5671_s15 = smov 36   ;;  %s5681_s16 = smov 60   ;;  %vm5770_vm10 = vcmask 359424   ;;  %vm5754_vm11 = vcmask 392192   ;;  %vm5752_vm12 = vcmask 424960   ;;  %vm5753_vm13 = vcmask 457728  }
  0x4e   : > { %s5717_s17 = smov 40   ;;  %s5719_s22 = smov 68   ;;  %vm5756_vm14 = vcmask 490496   ;;  %vm5755_vm15 = vcmask 523264  }
  0x4f   : > { %s5737_s23 = smov 48   ;;  %s5685_s26 = smov 76  }
  0x50   : > { %s5669_s28 = smov 44   ;;  %s5687_s25 = smov 84  }
  0x51   : > { %s5854_s0 = smov 120   ;;  %s5857_s14 = smov 24  }
  0x52   : > { %s5860_s10 = smov 32   ;;  %s5863_s20 = smov 40  }
  0x53   : > { %s5866_s8 = smov 48   ;;  %s5869_s7 = smov 56  }
  0x54   : > { %s5872_s11 = smov 64   ;;  %s5875_s21 = smov 72  }
  0x55   : > { %s5878_s6 = smov 80   ;;  %s5881_s1 = smov 88  }
  0x56   : > { %s5882_s19 = smov 68   ;;  %s5885_s24 = smov 96  }
  0x57   : > { %s5894_s9 = smov 116  }
  0x85   : > { %189 = vxpose.xlu0.b32.start.end [1/1] (short) %v155_v1, 128 }
  0xc8   : > { %v173_v12 = vpop.trf.xlu0 }
  0xc9   : > { %v228_v13 = vrot.slane %v173_v12, %v3620_v10  ;;  %v221_v17 = vcombine.high %v173_v12, %v5731_v16 }
  0xcb   : > { %v3627_v14 = vrot.slane %v228_v13, %v3623_v11  ;;  %v236_v18 = vcombine.high %v228_v13, %v5731_v16  ;;  %v235_v21 = vrot.slane %v221_v17, %v3620_v10 }
  0xcc   : > { %v174_v15 = vpop.trf.xlu0 }
  0xcd   : > { %5793 = vst [vmem:[#allocation20_spill] sm:$0xff] %v3627_v14  ;;  %v266_v19 = vcombine.high %v3627_v14, %v5731_v16  ;;  %v250_v22 = vrot.slane %v236_v18, %v3623_v11  ;;  %v258_v24 = vrot.slane %v235_v21, %v3623_v11  ;;  %v251_v29 = vcombine.high %v235_v21, %v5731_v16 }
  0xce   : > { %v277_v32 = vrot.slane %v174_v15, %v3620_v10  ;;  %v270_v48 = vcombine.high %v174_v15, %v5731_v16 }
  0xcf   : > { %1790 = vrot.lane.b32.xlu1 %v266_v19, %s5683_s18  ;;  %v267_v26 = vcombine.high %v250_v22, %v5731_v16  ;;  %v268_v28 = vcombine.high %v258_v24, %v5731_v16  ;;  %v265_v34 = vrot.slane %v251_v29, %v3623_v11  ;;  %s5729_s18 = smov 80  }
  0xd0   : > { %v3634_v20 = vpop.trf.xlu0  ;;  %v292_v37 = vrot.slane %v277_v32, %v3623_v11  ;;  %v285_v49 = vcombine.high %v277_v32, %v5731_v16  ;;  %v284_v56 = vrot.slane %v270_v48, %v3620_v10 }
  0xd1   : > { %v3653_v30 = vrot.slane %v3634_v20, %v3620_v10  ;;  %v269_v43 = vcombine.high %v265_v34, %v5731_v16 }
  0xd2   : > { %v315_v50 = vcombine.high %v292_v37, %v5731_v16  ;;  %v299_v57 = vrot.slane %v285_v49, %v3623_v11  ;;  %v307_v62 = vrot.slane %v284_v56, %v3623_v11  ;;  %v300_v12 = vcombine.high %v284_v56, %v5731_v16 }
  0xd3   : > { %1794 = vrot.lane.b32.xlu1 %v250_v22, %s5709_s27  ;;  %v334_v35 = vcombine.high %v3653_v30, %v5731_v16 }
  0xd4   : > { %v3639_v23 = vpop.trf.xlu0  ;;  %v316_v3 = vcombine.high %v299_v57, %v5731_v16  ;;  %v317_v9 = vcombine.high %v307_v62, %v5731_v16  ;;  %v314_v21 = vrot.slane %v300_v12, %v3623_v11 }
  0xd5   : > { %v3667_v40 = vrot.slane %v334_v35, %v3623_v11 }
  0xd6   : > { %v318_v35 = vcombine.high %v314_v21, %v5731_v16 }
  0xd7   : > { %1802 = vrot.lane.b32.xlu1 %v258_v24, %s5704_s29 }
  0xd8   : > { %v3643_v25 = vpop.trf.xlu0 }
  0xdb   : > { %1798 = vrot.lane.b32.xlu1 %v267_v26, %s5679_s30  ;;  %s5733_s30 = smov 116  }
  0xdc   : > { %v3647_v27 = vpop.trf.xlu0 }
  0xdd   : > { %v466_v31 = vcombine.high %v3647_v27, %v5731_v16 }
  0xdf   : > { %1806 = vrot.lane.b32.xlu1 %v268_v28, %s5677_s2  ;;  %v480_v36 = vrot.slane %v466_v31, %v3620_v10  ;;  %v341_v28 = vrot.slane %v3653_v30, %v3623_v11  ;;  %v319_v30 = vcombine.high %v3634_v20, %v5731_v16  ;;  %s5693_s2 = smov 108  }
  0xe0   : > { %v179_v33 = vpop.trf.xlu0 }
  0xe1   : > { %v496_v39 = vcombine.high %v480_v36, %v5731_v16  ;;  %v3670_v41 = vrot.slane %v480_v36, %v3623_v11  ;;  %v522_v45 = vrot.slane %v179_v33, %v3620_v10  ;;  %v515_v51 = vcombine.high %v179_v33, %v5731_v16 }
  0xe2   : > { %v333_v20 = vrot.slane %v319_v30, %v3620_v10 }
  0xe3   : > { %1810 = vrot.lane.b32.xlu1 %v265_v34, %s5707_s3  ;;  %v513_v44 = vcombine.high %v3670_v41, %v5731_v16  ;;  %v3682_v46 = vrot.slane %v496_v39, %v3623_v11  ;;  %v530_v52 = vcombine.high %v522_v45, %v5731_v16  ;;  %v3694_v53 = vrot.slane %v522_v45, %v3623_v11 }
  0xe4   : > { %v180_v38 = vpop.trf.xlu0  ;;  %v529_v58 = vrot.slane %v515_v51, %v3620_v10 }
  0xe5   : > { %v514_v54 = vcombine.high %v3682_v46, %v5731_v16  ;;  %v560_v59 = vcombine.high %v3694_v53, %v5731_v16  ;;  %v3708_v60 = vrot.slane %v530_v52, %v3623_v11  ;;  %v571_v4 = vrot.slane %v180_v38, %v3620_v10 }
  0xe6   : > { %v545_v63 = vcombine.high %v529_v58, %v5731_v16  ;;  %v3719_v1 = vrot.slane %v529_v58, %v3623_v11  ;;  %v564_v13 = vcombine.high %v180_v38, %v5731_v16 }
  0xe7   : > { %1818 = vrot.lane.b32.xlu1 %v292_v37, %s5712_s4  ;;  %v561_v0 = vcombine.high %v3708_v60, %v5731_v16  ;;  %v579_v15 = vcombine.high %v571_v4, %v5731_v16  ;;  %v3740_v17 = vrot.slane %v571_v4, %v3623_v11 }
  0xe8   : > { %v3673_v42 = vpop.trf.xlu0  ;;  %v562_v5 = vcombine.high %v3719_v1, %v5731_v16  ;;  %v3730_v6 = vrot.slane %v545_v63, %v3623_v11  ;;  %v578_v22 = vrot.slane %v564_v13, %v3620_v10 }
  0xe9   : > { %v609_v24 = vcombine.high %v3740_v17, %v5731_v16  ;;  %v3754_v26 = vrot.slane %v579_v15, %v3623_v11  ;;  %v3776_v36 = vrot.slane %v3673_v42, %v3620_v10 }
  0xea   : > { %1858 = vrot.lane.b32.xlu0 %v3667_v40, %s5725_s5  ;;  %v563_v18 = vcombine.high %v3730_v6, %v5731_v16  ;;  %v594_v31 = vcombine.high %v578_v22, %v5731_v16  ;;  %v3766_v33 = vrot.slane %v578_v22, %v3623_v11 }
  0xeb   : > { %1814 = vrot.lane.b32.xlu1 %v269_v43, %s5675_s12  ;;  %v610_v32 = vcombine.high %v3754_v26, %v5731_v16  ;;  %s5723_s12 = smov 64   ;;  %v364_v43 = vcombine.high %v341_v28, %v5731_v16  ;;  %v628_v45 = vcombine.high %v3776_v36, %v5731_v16 }
  0xec   : > { %v3685_v47 = vpop.trf.xlu0  ;;  %v611_v37 = vcombine.high %v3766_v33, %v5731_v16  ;;  %v3782_v38 = vrot.slane %v594_v31, %v3623_v11 }
  0xed   : > { %v669_v63 = vrot.slane %v3685_v47, %v3620_v10 }
  0xee   : > { %1962 = vrot.lane.b32.xlu0 %v513_v44, %s5673_s13  ;;  %v613_v44 = vcombine.high %v3673_v42, %v5731_v16  ;;  %v612_v48 = vcombine.high %v3782_v38, %v5731_v16  ;;  %v3803_v42 = vrot.slane %v628_v45, %v3623_v11 }
  0xef   : > { %1822 = vrot.lane.b32.xlu1 %v315_v50, %s5671_s15  ;;  %s5721_s15 = smov 56   ;;  %v356_v50 = vrot.slane %v333_v20, %v3623_v11  ;;  %v3840_v12 = vrot.slane %v669_v63, %v3623_v11 }
  0xf0   : > { %v3699_v55 = vpop.trf.xlu0  ;;  %v627_v51 = vrot.slane %v613_v44, %v3620_v10 }
  0xf1   : > { %v718_v30 = vrot.slane %v3699_v55, %v3620_v10  ;;  %v711_v44 = vcombine.high %v3699_v55, %v5731_v16 }
  0xf2   : > { %1970 = vrot.lane.b32.xlu0 %v514_v54, %s5681_s16  ;;  %v365_v54 = vcombine.high %v3667_v40, %v5731_v16  ;;  %v3813_v56 = vrot.slane %v627_v51, %v3623_v11 }
  0xf3   : > { %1826 = vrot.lane.b32.xlu1 %v299_v57, %s5717_s17  ;;  %v643_v57 = vcombine.high %v627_v51, %v5731_v16  ;;  %v726_v45 = vcombine.high %v718_v30, %v5731_v16  ;;  %v725_v51 = vrot.slane %v711_v44, %v3620_v10 }
  0xf4   : > { %v3711_v61 = vpop.trf.xlu0 }
  0xf5   : > { %v3826_v40 = vrot.slane %v643_v57, %v3623_v11  ;;  %v3893_v55 = vrot.slane %v726_v45, %v3623_v11 }
  0xf6   : > { %1978 = vrot.lane.b32.xlu0 %v560_v59, %s5719_s22  ;;  %v366_v59 = vcombine.high %v356_v50, %v5731_v16 }
  0xf7   : > { %1834 = vrot.lane.b32.xlu1 %v307_v62, %s5737_s23  ;;  %v349_v62 = vcombine.high %v333_v20, %v5731_v16  ;;  %v368_v20 = vcombine.high %v3639_v23, %v5731_v16 }
  0xf8   : > { %v3722_v2 = vpop.trf.xlu0 }
  0xf9   : > { %v363_v4 = vrot.slane %v349_v62, %v3623_v11  ;;  %v3903_v62 = vrot.slane %v725_v51, %v3623_v11 }
  0xfa   : > { %1986 = vrot.lane.b32.xlu0 %v561_v0, %s5685_s26  ;;  %v375_v0 = vrot.slane %v3639_v23, %v3620_v10 }
  0xfb   : > { %1830 = vrot.lane.b32.xlu1 %v316_v3, %s5669_s28  ;;  %s5689_s28 = smov 92  }
  0xfc   : > { %v3733_v7 = vpop.trf.xlu0  ;;  %v390_v13 = vrot.slane %v375_v0, %v3623_v11  ;;  %v383_v31 = vcombine.high %v375_v0, %v5731_v16 }
  0xfe   : > { %1994 = vrot.lane.b32.xlu0 %v562_v5, %s5687_s25  ;;  %v662_v5 = vcombine.high %v3685_v47, %v5731_v16 }
  0xff   : > { %1838 = vrot.lane.b32.xlu1 %v317_v9, %s5673_s13  ;;  %s5691_s13 = smov 100   ;;  %v677_v9 = vcombine.high %v669_v63, %v5731_v16 }
 0x100   : > { %v3746_v19 = vpop.trf.xlu0 }
 0x101   : > { %v3850_v47 = vrot.slane %v677_v9, %v3623_v11 }
 0x102   : > { %2002 = vrot.lane.b32.xlu0 %v563_v18, %s5689_s28  ;;  %v676_v18 = vrot.slane %v662_v5, %v3620_v10  ;;  %v767_v5 = vrot.slane %v3711_v61, %v3620_v10 }
 0x103   : > { %1842 = vrot.lane.b32.xlu1 %v314_v21, %s5721_s15  ;;  %v367_v21 = vcombine.high %v363_v4, %v5731_v16 }
 0x104   : > { %v3759_v29 = vpop.trf.xlu0  ;;  %v692_v22 = vcombine.high %v676_v18, %v5731_v16 }
 0x106   : > { %2010 = vrot.lane.b32.xlu0 %v609_v24, %s5691_s13  ;;  %v3858_v24 = vrot.slane %v676_v18, %v3623_v11 }
 0x107   : > { %1850 = vrot.lane.b32.xlu1 %v341_v28, %s5723_s12 }
 0x108   : > { %v3769_v34 = vpop.trf.xlu0 }
 0x10a   : > { %2018 = vrot.lane.b32.xlu0 %v610_v32, %s5693_s2  ;;  %v413_v32 = vcombine.high %v390_v13, %v5731_v16 }
 0x10b   : > { %1846 = vrot.lane.b32.xlu1 %v318_v35, %s5681_s16  ;;  %s5695_s16 = smov 124   ;;  %v3870_v35 = vrot.slane %v692_v22, %v3623_v11  ;;  %v775_v22 = vcombine.high %v767_v5, %v5731_v16 }
 0x10c   : > { %v3785_v39 = vpop.trf.xlu0 }
 0x10d   : > { %v3942_v44 = vrot.slane %v775_v22, %v3623_v11 }
 0x10e   : > { %2026 = vrot.lane.b32.xlu0 %v611_v37, %s5733_s30 }
 0x10f   : > { %1854 = vrot.lane.b32.xlu1 %v364_v43, %s5719_s22  ;;  %v397_v43 = vrot.slane %v383_v31, %v3623_v11  ;;  %v3925_v31 = vrot.slane %v767_v5, %v3623_v11 }
 0x110   : > { %v3797_v49 = vpop.trf.xlu0 }
 0x111   : > { %v414_v23 = vcombine.high %v397_v43, %v5731_v16 }
 0x112   : > { %2034 = vrot.lane.b32.xlu0 %v612_v48, %s5695_s16  ;;  %v3882_v48 = vrot.slane %v718_v30, %v3623_v11 }
 0x113   : > { %1866 = vrot.lane.b32.xlu1 %v356_v50, %s5729_s18  ;;  %v382_v50 = vrot.slane %v368_v20, %v3620_v10 }
 0x114   : > { %v3806_v52 = vpop.trf.xlu0 }
 0x115   : > { %v405_v57 = vrot.slane %v382_v50, %v3623_v11 }
 0x116   : > { %2042 = vrot.lane.b32.xlu0 %v3803_v42, %s5709_s27 }
 0x117   : > { %1862 = vrot.lane.b32.xlu1 %v365_v54, %s5685_s26  ;;  %s5727_s26 = smov 88   ;;  %v415_v0 = vcombine.high %v405_v57, %v5731_v16 }
 0x118   : > { %v3817_v58 = vpop.trf.xlu0 }
 0x11a   : > { %2050 = vrot.lane.b32.xlu0 %v3813_v56, %s5704_s29 }
 0x11b   : > { %1870 = vrot.lane.b32.xlu1 %v366_v59, %s5687_s25  ;;  %s5735_s25 = smov 96   ;;  %v741_v59 = vcombine.high %v725_v51, %v5731_v16 }
 0x11c   : > { %v3831_v3 = vpop.trf.xlu0 }
 0x11d   : > { %v3915_v9 = vrot.slane %v741_v59, %v3623_v11  ;;  %v816_v59 = vrot.slane %v3722_v2, %v3620_v10 }
 0x11e   : > { %2058 = vrot.lane.b32.xlu0 %v3826_v40, %s5707_s3 }
 0x11f   : > { %1874 = vrot.lane.b32.xlu1 %v363_v4, %s5727_s26  ;;  %v398_v4 = vcombine.high %v382_v50, %v5731_v16  ;;  %v3970_v22 = vrot.slane %v816_v59, %v3623_v11 }
 0x120   : > { %v3844_v15 = vpop.trf.xlu0 }
 0x121   : > { %v412_v18 = vrot.slane %v398_v4, %v3623_v11  ;;  %v417_v4 = vcombine.high %v3643_v25, %v5731_v16  ;;  %5801 = vst [vmem:[#allocation27_spill] sm:$0xff] %v3970_v22 }
 0x122   : > { %2066 = vrot.lane.b32.xlu0 %v3840_v12, %s5712_s4 }
 0x123   : > { %1882 = vrot.lane.b32.xlu1 %v390_v13, %s5735_s25  ;;  %v424_v13 = vrot.slane %v3643_v25, %v3620_v10  ;;  %v431_v25 = vrot.slane %v417_v4, %v3620_v10 }
 0x124   : > { %v3860_v28 = vpop.trf.xlu0 }
 0x125   : > { %v3932_v30 = vrot.slane %v424_v13, %v3623_v11 }
 0x126   : > { %2074 = vrot.lane.b32.xlu0 %v3850_v47, %s5717_s17 }
 0x127   : > { %1878 = vrot.lane.b32.xlu1 %v367_v21, %s5689_s28  ;;  %s5714_s28 = smov 104   ;;  %v760_v21 = vcombine.high %v3711_v61, %v5731_v16  ;;  %5796 = vst [vmem:[#allocation23_spill] sm:$0xff] %v3932_v30  ;;  %v416_v61 = vcombine.high %v412_v18, %v5731_v16  ;;  %v462_v45 = vcombine.high %v3932_v30, %v5731_v16 }
 0x128   : > { %v3873_v37 = vpop.trf.xlu0 }
 0x12a   : > { %2082 = vrot.lane.b32.xlu0 %v3858_v24, %s5737_s23 }
 0x12b   : > { %1886 = vrot.lane.b32.xlu1 %v413_v32, %s5691_s13  ;;  %s5697_s13 = smov 112  }
 0x12c   : > { %v3895_v54 = vpop.trf.xlu0 }
 0x12e   : > { %2090 = vrot.lane.b32.xlu0 %v3870_v35, %s5721_s15 }
 0x12f   : > { %1890 = vrot.lane.b32.xlu1 %v397_v43, %s5714_s28  ;;  %v774_v43 = vrot.slane %v760_v21, %v3620_v10  ;;  %v824_v21 = vcombine.high %v816_v59, %v5731_v16 }
 0x130   : > { %v3906_v63 = vpop.trf.xlu0 }
 0x131   : > { %5794 = vst [vmem:[#allocation21_spill] sm:$0xff] %v3906_v63  ;;  %v3986_v59 = vrot.slane %v824_v21, %v3623_v11 }
 0x132   : > { %2098 = vrot.lane.b32.xlu0 %v3882_v48, %s5723_s12 }
 0x133   : > { %1894 = vrot.lane.b32.xlu1 %v414_v23, %s5693_s2  ;;  %s5701_s2 = smov 120   ;;  %v432_v23 = vcombine.high %v424_v13, %v5731_v16  ;;  %v855_v21 = vcombine.high %v3986_v59, %v5731_v16 }
 0x134   : > { %v3929_v32 = vpop.trf.xlu0 }
 0x135   : > { %5795 = vst [vmem:[#allocation22_spill] sm:$0xff] %v3929_v32  ;;  %v446_v13 = vrot.slane %v432_v23, %v3623_v11 }
 0x136   : > { %2106 = vrot.lane.b32.xlu0 %v3893_v55, %s5725_s5 }
 0x137   : > { %1898 = vrot.lane.b32.xlu1 %v405_v57, %s5697_s13  ;;  %v790_v57 = vcombine.high %v774_v43, %v5731_v16 }
 0x138   : > { %v3947_v50 = vpop.trf.xlu0 }
 0x13a   : > { %2114 = vrot.lane.b32.xlu0 %v3903_v62, %s5729_s18 }
 0x13b   : > { %1902 = vrot.lane.b32.xlu1 %v415_v0, %s5733_s30  ;;  %v3958_v0 = vrot.slane %v774_v43, %v3623_v11 }
 0x13c   : > { %v3977_v43 = vpop.trf.xlu0 }
 0x13e   : > { %2122 = vrot.lane.b32.xlu0 %v3915_v9, %s5727_s26 }
 0x13f   : > { %1906 = vrot.lane.b32.xlu1 %v412_v18, %s5701_s2  ;;  %v809_v18 = vcombine.high %v3722_v2, %v5731_v16  ;;  %v463_v2 = vcombine.high %v446_v13, %v5731_v16 }
 0x140   : > { %v3993_v8 = vpop.trf.xlu0 }
 0x141   : > { %v3935_v20 = vpop.permute.xlu1 %1790  ;;  %v823_v23 = vrot.slane %v809_v18, %v3620_v10 }
 0x142   : > { %5797 = vst [vmem:[#allocation24_spill] sm:$0xff] %v3935_v20  ;;  %2130 = vrot.lane.b32.xlu0 %v3925_v31, %s5735_s25 }
 0x143   : > { %1910 = vrot.lane.b32.xlu1 %v416_v61, %s5695_s16  ;;  %s5799_s16 = smov 4   ;;  %v3975_v61 = vrot.slane %v790_v57, %v3623_v11  ;;  %v854_v57 = vcombine.high %v3970_v22, %v5731_v16  ;;  %v4000_v18 = vrot.slane %v823_v23, %v3623_v11 }
 0x145   : > { %v3950_v51 = vpop.permute.xlu1 %1794 }
 0x146   : > { %5798 = vst [vmem:[#allocation25_spill] sm:$0xff] %v3950_v51  ;;  %2138 = vrot.lane.b32.xlu0 %v3942_v44, %s5714_s28  ;;  %v865_v51 = vrot.slane %v3733_v7, %v3620_v10  ;;  %s5822_s28 = smov 60  }
 0x147   : > { %1914 = vrot.lane.b32.xlu1 %v462_v45, %s5799_s16 }
 0x148   : > { %v873_v20 = vcombine.high %v865_v51, %v5731_v16 }
 0x149   : > { %v3963_v5 = vpop.permute.xlu1 %1802 }
 0x14a   : > { %5800 = vst [vmem:[#allocation26_spill] sm:$0xff] %v3963_v5  ;;  %2146 = vrot.lane.b32.xlu0 %v3958_v0, %s5697_s13  ;;  %s5803_s13 = smov 12   ;;  %v454_v5 = vrot.slane %v431_v25, %v3623_v11 }
 0x14b   : > { %1918 = vrot.lane.b32.xlu1 %v446_v13, %s5709_s27  ;;  %v839_v13 = vcombine.high %v823_v23, %v5731_v16  ;;  %v4013_v23 = vpop.trf.xlu0  ;;  %s5816_s27 = smov 44  }
 0x14d   : > { %v3981_v45 = vpop.permute.xlu1 %1798  ;;  %v4018_v14 = vrot.slane %v839_v13, %v3623_v11 }
 0x14e   : > { %5802 = vst [vmem:[#allocation28_spill] sm:$0xff] %v3981_v45  ;;  %2154 = vrot.lane.b32.xlu0 %v3975_v61, %s5701_s2  ;;  %s5806_s2 = smov 20  }
 0x14f   : > { %1922 = vrot.lane.b32.xlu1 %v463_v2, %s5803_s13  ;;  %v464_v2 = vcombine.high %v454_v5, %v5731_v16  ;;  %v857_v13 = vcombine.high %v4018_v14, %v5731_v16 }
 0x151   : > { %v3995_v4 = vpop.permute.xlu1 %1806 }
 0x152   : > { %5804 = vst [vmem:[#allocation29_spill] sm:$0xff] %v3995_v4  ;;  %2162 = vrot.lane.b32.xlu0 %v854_v57, %s5799_s16  ;;  %v447_v4 = vcombine.high %v431_v25, %v5731_v16  ;;  %v856_v57 = vcombine.high %v4000_v18, %v5731_v16  ;;  %v858_v25 = vcombine.high %v3733_v7, %v5731_v16 }
 0x153   : > { %1926 = vrot.lane.b32.xlu1 %v454_v5, %s5704_s29  ;;  %s5810_s29 = smov 28  }
 0x154   : > { %v461_v5 = vrot.slane %v447_v4, %v3623_v11  ;;  %v872_v30 = vrot.slane %v858_v25, %v3620_v10 }
 0x155   : > { %v4006_v45 = vpop.permute.xlu1 %1810 }
 0x156   : > { %5805 = vst [vmem:[#allocation30_spill] sm:$0xff] %v4006_v45  ;;  %2170 = vrot.lane.b32.xlu0 %v855_v21, %s5803_s13  ;;  %v4028_v21 = vrot.slane %v865_v51, %v3623_v11  ;;  %v465_v7 = vcombine.high %v461_v5, %v5731_v16  ;;  %v4043_v51 = vrot.slane %v873_v20, %v3623_v11 }
 0x157   : > { %1930 = vrot.lane.b32.xlu1 %v464_v2, %s5806_s2  ;;  %v473_v2 = vrot.slane %v3647_v27, %v3620_v10  ;;  %v4056_v25 = vrot.slane %v872_v30, %v3623_v11 }
 0x158   : > { %v904_v20 = vcombine.high %v4043_v51, %v5731_v16 }
 0x159   : > { %v4021_v45 = vpop.permute.xlu1 %1818  ;;  %v488_v27 = vrot.slane %v473_v2, %v3623_v11 }
 0x15a   : > { %5807 = vst [vmem:[#allocation31_spill] sm:$0xff] %v4021_v45  ;;  %2178 = vrot.lane.b32.xlu0 %v856_v57, %s5806_s2  ;;  %v903_v57 = vcombine.high %v4028_v21, %v5731_v16 }
 0x15b   : > { %1934 = vrot.lane.b32.xlu1 %v461_v5, %s5707_s3  ;;  %v888_v5 = vcombine.high %v872_v30, %v5731_v16  ;;  %s5813_s3 = smov 36   ;;  %v905_v30 = vcombine.high %v4056_v25, %v5731_v16 }
 0x15c   : > { %v4036_v45 = vpop.permute.xlu0 %1858 }
 0x15d   : > { %5808 = vst [vmem:[#allocation32_spill] sm:$0xff] %v4036_v45  ;;  %v4038_v4 = vpop.permute.xlu1 %1814 }
 0x15e   : > { %5809 = vst [vmem:[#allocation33_spill] sm:$0xff] %v4038_v4  ;;  %2186 = vrot.lane.b32.xlu0 %v857_v13, %s5810_s29 }
 0x15f   : > { %1938 = vrot.lane.b32.xlu1 %v465_v7, %s5810_s29  ;;  %v481_v7 = vcombine.high %v473_v2, %v5731_v16 }
 0x160   : > { %v4050_v22 = vpop.permute.xlu0 %1962 }
 0x161   : > { %5811 = vst [vmem:[#allocation34_spill] sm:$0xff] %v4050_v22  ;;  %v4052_v45 = vpop.permute.xlu1 %1822  ;;  %v914_v22 = vrot.slane %v3746_v19, %v3620_v10 }
 0x162   : > { %5812 = vst [vmem:[#allocation35_spill] sm:$0xff] %v4052_v45  ;;  %2194 = vrot.lane.b32.xlu0 %v903_v57, %s5813_s3  ;;  %v511_v45 = vcombine.high %v488_v27, %v5731_v16  ;;  %v4074_v57 = vrot.slane %v888_v5, %v3623_v11 }
 0x163   : > { %1942 = vrot.lane.b32.xlu1 %v488_v27, %s5712_s4  ;;  %v907_v27 = vcombine.high %v3746_v19, %v5731_v16  ;;  %v922_v32 = vcombine.high %v914_v22, %v5731_v16  ;;  %s5819_s4 = smov 52  }
 0x164   : > { %v4062_v13 = vpop.permute.xlu0 %1970  ;;  %v906_v5 = vcombine.high %v4074_v57, %v5731_v16 }
 0x165   : > { %5814 = vst [vmem:[#allocation36_spill] sm:$0xff] %v4062_v13  ;;  %v4065_v4 = vpop.permute.xlu1 %1826  ;;  %v921_v19 = vrot.slane %v907_v27, %v3620_v10 }
 0x166   : > { %5815 = vst [vmem:[#allocation37_spill] sm:$0xff] %v4065_v4  ;;  %2202 = vrot.lane.b32.xlu0 %v904_v20, %s5816_s27  ;;  %v495_v4 = vrot.slane %v481_v7, %v3623_v11  ;;  %v4086_v20 = vrot.slane %v914_v22, %v3623_v11 }
 0x167   : > { %1946 = vrot.lane.b32.xlu1 %v511_v45, %s5813_s3 }
 0x168   : > { %v4077_v13 = vpop.permute.xlu0 %1978  ;;  %v512_v7 = vcombine.high %v495_v4, %v5731_v16  ;;  %v952_v22 = vcombine.high %v4086_v20, %v5731_v16 }
 0x169   : > { %5817 = vst [vmem:[#allocation38_spill] sm:$0xff] %v4077_v13  ;;  %v4079_v2 = vpop.permute.xlu1 %1834 }
 0x16a   : > { %5818 = vst [vmem:[#allocation39_spill] sm:$0xff] %v4079_v2  ;;  %2210 = vrot.lane.b32.xlu0 %v905_v30, %s5819_s4  ;;  %v4099_v2 = vrot.slane %v922_v32, %v3623_v11 }
 0x16b   : > { %1950 = vrot.lane.b32.xlu1 %v495_v4, %s5717_s17  ;;  %v4111_v4 = vrot.slane %v921_v19, %v3623_v11  ;;  %s5827_s17 = smov 76  }
 0x16c   : > { %v4092_v45 = vpop.permute.xlu0 %1986  ;;  %v953_v32 = vcombine.high %v4099_v2, %v5731_v16 }
 0x16d   : > { %5820 = vst [vmem:[#allocation40_spill] sm:$0xff] %v4092_v45  ;;  %v4094_v13 = vpop.permute.xlu1 %1830  ;;  %v937_v45 = vcombine.high %v921_v19, %v5731_v16  ;;  %v954_v19 = vcombine.high %v4111_v4, %v5731_v16 }
 0x16e   : > { %5821 = vst [vmem:[#allocation41_spill] sm:$0xff] %v4094_v13  ;;  %2218 = vrot.lane.b32.xlu0 %v906_v5, %s5822_s28 }
 0x16f   : > { %1954 = vrot.lane.b32.xlu1 %v512_v7, %s5816_s27  ;;  %v963_v7 = vrot.slane %v3759_v29, %v3620_v10 }
 0x170   : > { %v4105_v30 = vpop.permute.xlu0 %1994 }
 0x171   : > { %5823 = vst [vmem:[#allocation42_spill] sm:$0xff] %v4105_v30  ;;  %v4107_v63 = vpop.permute.xlu1 %1838 }
 0x172   : > { %5824 = vst [vmem:[#allocation43_spill] sm:$0xff] %v4107_v63  ;;  %2226 = vrot.lane.b32.xlu0 %v952_v22, %s5719_s22  ;;  %v4128_v22 = vrot.slane %v937_v45, %v3623_v11  ;;  %s5830_s22 = smov 84  }
 0x173   : > { %1958 = vrot.lane.b32.xlu1 %v3670_v41, %s5737_s23  ;;  %s5853_s23 = smov 16  }
 0x174   : > { %v4118_v27 = vpop.permute.xlu0 %2002  ;;  %v955_v45 = vcombine.high %v4128_v22, %v5731_v16 }
 0x175   : > { %5825 = vst [vmem:[#allocation44_spill] sm:$0xff] %v4118_v27  ;;  %v4120_v5 = vpop.permute.xlu1 %1842  ;;  %v956_v27 = vcombine.high %v3759_v29, %v5731_v16 }
 0x176   : > { %5826 = vst [vmem:[#allocation45_spill] sm:$0xff] %v4120_v5  ;;  %2234 = vrot.lane.b32.xlu0 %v953_v32, %s5827_s17  ;;  %v971_v5 = vcombine.high %v963_v7, %v5731_v16  ;;  %v4140_v32 = vrot.slane %v963_v7, %v3623_v11 }
 0x177   : > { %1966 = vrot.lane.b32.xlu1 %v3682_v46, %s5721_s15  ;;  %s5833_s15 = smov 92  }
 0x178   : > { %v4132_v30 = vpop.permute.xlu0 %2010  ;;  %v4153_v29 = vrot.slane %v971_v5, %v3623_v11  ;;  %v1001_v7 = vcombine.high %v4140_v32, %v5731_v16 }
 0x179   : > { %5828 = vst [vmem:[#allocation46_spill] sm:$0xff] %v4132_v30  ;;  %v4134_v41 = vpop.permute.xlu1 %1850 }
 0x17a   : > { %5829 = vst [vmem:[#allocation47_spill] sm:$0xff] %v4134_v41  ;;  %2242 = vrot.lane.b32.xlu0 %v954_v19, %s5830_s22  ;;  %v970_v41 = vrot.slane %v956_v27, %v3620_v10  ;;  %v1002_v27 = vcombine.high %v4153_v29, %v5731_v16 }
 0x17b   : > { %1974 = vrot.lane.b32.xlu1 %v3694_v53, %s5723_s12  ;;  %s5836_s12 = smov 100  }
 0x17c   : > { %v4147_v46 = vpop.permute.xlu0 %2018 }
 0x17d   : > { %5831 = vst [vmem:[#allocation48_spill] sm:$0xff] %v4147_v46  ;;  %v4149_v30 = vpop.permute.xlu1 %1846  ;;  %v986_v46 = vcombine.high %v970_v41, %v5731_v16 }
 0x17e   : > { %5832 = vst [vmem:[#allocation49_spill] sm:$0xff] %v4149_v30  ;;  %2250 = vrot.lane.b32.xlu0 %v955_v45, %s5833_s15  ;;  %v4166_v30 = vrot.slane %v970_v41, %v3623_v11  ;;  %v4179_v45 = vrot.slane %v3769_v34, %v3620_v10 }
 0x17f   : > { %1982 = vrot.lane.b32.xlu1 %v3708_v60, %s5725_s5  ;;  %s5839_s5 = smov 108  }
 0x180   : > { %v4160_v19 = vpop.permute.xlu0 %2026  ;;  %v1003_v41 = vcombine.high %v4166_v30, %v5731_v16 }
 0x181   : > { %5834 = vst [vmem:[#allocation50_spill] sm:$0xff] %v4160_v19  ;;  %v4162_v53 = vpop.permute.xlu1 %1854  ;;  %v1005_v19 = vcombine.high %v3769_v34, %v5731_v16 }
 0x182   : > { %5835 = vst [vmem:[#allocation51_spill] sm:$0xff] %v4162_v53  ;;  %2258 = vrot.lane.b32.xlu0 %v1001_v7, %s5836_s12  ;;  %v4185_v7 = vrot.slane %v986_v46, %v3623_v11  ;;  %v5848_v53 = vmov 0.0  }
 0x183   : > { %1990 = vrot.lane.b32.xlu1 %v3719_v1, %s5729_s18  ;;  %s5845_s18 = smov 104  }
 0x184   : > { %v4173_v5 = vpop.permute.xlu0 %2034 }
 0x185   : > { %5837 = vst [vmem:[#allocation52_spill] sm:$0xff] %v4173_v5  ;;  %v4175_v60 = vpop.permute.xlu1 %1866 }
 0x186   : > { %5838 = vst [vmem:[#allocation53_spill] sm:$0xff] %v4175_v60  ;;  %2266 = vrot.lane.b32.xlu0 %v1002_v27, %s5839_s5  ;;  %v1020_v60 = vcombine.high %v4179_v45, %v5731_v16  ;;  %v1004_v27 = vcombine.high %v4185_v7, %v5731_v16 }
 0x187   : > { %1998 = vrot.lane.b32.xlu1 %v3730_v6, %s5727_s26  ;;  %s5844_s26 = smov 124  }
 0x188   : > { %v4189_v1 = vpop.permute.xlu0 %2042  ;;  %v4209_v34 = vrot.slane %v1020_v60, %v3623_v11 }
 0x189   : > { %5840 = vst [vmem:[#allocation54_spill] sm:$0xff] %v4189_v1  ;;  %v4191_v5 = vpop.permute.xlu1 %1862 }
 0x18a   : > { %5841 = vst [vmem:[#allocation55_spill] sm:$0xff] %v4191_v5  ;;  %2274 = vrot.lane.b32.xlu0 %v1003_v41, %s5733_s30  ;;  %v1019_v5 = vrot.slane %v1005_v19, %v3620_v10  ;;  %s5849_s30 = smov 8  }
 0x18b   : > { %2006 = vrot.lane.b32.xlu1 %v3740_v17, %s5735_s25  ;;  %s5850_s25 = smov 112  }
 0x18c   : > { %v4202_v46 = vpop.permute.xlu0 %2050  ;;  %v1035_v17 = vcombine.high %v1019_v5, %v5848_v53 }
 0x18d   : > { %5842 = vst [vmem:[#allocation56_spill] sm:$0xff] %v4202_v46  ;;  %v4204_v6 = vpop.permute.xlu1 %1870 }
 0x18e   : > { %5843 = vst [vmem:[#allocation57_spill] sm:$0xff] %v4204_v6  ;;  %2282 = vrot.lane.b32.xlu0 %v1004_v27, %s5844_s26  ;;  %v4221_v6 = vrot.slane %v1019_v5, %v3623_v11  ;;  %v1061_v27 = vrot.slane %v3785_v39, %v3620_v10  ;;  %v4238_v5 = vrot.slane %v1035_v17, %v3623_v11 }
 0x18f   : > { %2014 = vrot.lane.b32.xlu1 %v3754_v26, %s5845_s18  ;;  %v4229_v26 = vrot.slane %v3776_v36, %v3623_v11  ;;  %v659_v17 = vcombine.high %v3803_v42, %v5848_v53 }
 0x190   : > { %v4213_v41 = vpop.permute.xlu0 %2058  ;;  %v1069_v63 = vcombine.high %v1061_v27, %v5848_v53  ;;  %v4252_v13 = vrot.slane %v1061_v27, %v3623_v11 }
 0x191   : > { %5846 = vst [vmem:[#allocation58_spill] sm:$0xff] %v4213_v41  ;;  %v4215_v16 = vpop.permute.xlu1 %1874  ;;  %v658_v36 = vcombine.high %v4229_v26, %v5848_v53 }
 0x192   : > { %5847 = vst [vmem:[#allocation59_spill] sm:$0xff] %v4215_v16  ;;  %2290 = vrot.lane.b32.xlu0 %v4209_v34, %s5849_s30  ;;  %v1099_v46 = vcombine.high %v4252_v13, %v5848_v53 }
 0x193   : > { %2022 = vrot.lane.b32.xlu1 %v3766_v33, %s5850_s25 }
 0x194   : > { %v4225_v19 = vpop.permute.xlu0 %2066 }
 0x195   : > { %5851 = vst [vmem:[#allocation60_spill] sm:$0xff] %v4225_v19  ;;  %v4231_v60 = vpop.permute.xlu1 %1882 }
 0x196   : > { %5852 = vst [vmem:[#allocation61_spill] sm:$0xff] %v4231_v60  ;;  %2298 = vrot.lane.b32.xlu0 %v4221_v6, %s5853_s23  ;;  %v1054_v60 = vcombine.high %v3785_v39, %v5848_v53  ;;  %v4267_v39 = vrot.slane %v1069_v63, %v3623_v11 }
 0x197   : > { %2030 = vrot.lane.b32.xlu1 %v3782_v38, %s5854_s0 }
 0x198   : > { %v4242_v33 = vpop.permute.xlu0 %2074 }
 0x199   : > { %5855 = vst [vmem:[#allocation62_spill] sm:$0xff] %v4242_v33  ;;  %v4244_v16 = vpop.permute.xlu1 %1878  ;;  %v1068_v33 = vrot.slane %v1054_v60, %v3620_v10 }
 0x19a   : > { %5856 = vst [vmem:[#allocation63_spill] sm:$0xff] %v4244_v16  ;;  %2306 = vrot.lane.b32.xlu0 %v4238_v5, %s5857_s14 }
 0x19b   : > { %2038 = vrot.lane.b32.xlu1 %v658_v36, %s5799_s16  ;;  %v660_v36 = vcombine.high %v3813_v56, %v5848_v53  ;;  %v1084_v42 = vcombine.high %v1068_v33, %v5848_v53  ;;  %v4280_v60 = vrot.slane %v1068_v33, %v3623_v11  ;;  %v1110_v56 = vrot.slane %v3797_v49, %v3620_v10 }
 0x19c   : > { %v4257_v38 = vpop.permute.xlu0 %2082 }
 0x19d   : > { %5858 = vst [vmem:[#allocation64_spill] sm:$0xff] %v4257_v38  ;;  %v4261_v16 = vpop.permute.xlu1 %1886 }
 0x19e   : > { %5859 = vst [vmem:[#allocation65_spill] sm:$0xff] %v4261_v16  ;;  %2314 = vrot.lane.b32.xlu0 %v4252_v13, %s5860_s10  ;;  %v1649_v13 = vrot.slane %v3977_v43, %v3620_v10 }
 0x19f   : > { %2046 = vrot.lane.b32.xlu1 %v659_v17, %s5803_s13  ;;  %v661_v17 = vcombine.high %v3826_v40, %v5848_v53  ;;  %v4304_v40 = vrot.slane %v1110_v56, %v3623_v11 }
 0x1a0   : > { %v4270_v27 = vpop.permute.xlu0 %2090 }
 0x1a1   : > { %5861 = vst [vmem:[#allocation66_spill] sm:$0xff] %v4270_v27  ;;  %v4274_v38 = vpop.permute.xlu1 %1890 }
 0x1a2   : > { %5862 = vst [vmem:[#allocation67_spill] sm:$0xff] %v4274_v38  ;;  %2322 = vrot.lane.b32.xlu0 %v4267_v39, %s5863_s20  ;;  %v4294_v38 = vrot.slane %v1084_v42, %v3623_v11  ;;  %v1103_v42 = vcombine.high %v3797_v49, %v5848_v53 }
 0x1a3   : > { %2054 = vrot.lane.b32.xlu1 %v660_v36, %s5806_s2  ;;  %v707_v36 = vcombine.high %v3840_v12, %v5848_v53  ;;  %v708_v12 = vcombine.high %v3850_v47, %v5848_v53 }
 0x1a4   : > { %v4283_v63 = vpop.permute.xlu0 %2098 }
 0x1a5   : > { %5864 = vst [vmem:[#allocation68_spill] sm:$0xff] %v4283_v63  ;;  %v4287_v16 = vpop.permute.xlu1 %1894 }
 0x1a6   : > { %5865 = vst [vmem:[#allocation69_spill] sm:$0xff] %v4287_v16  ;;  %2330 = vrot.lane.b32.xlu0 %v4280_v60, %s5866_s8 }
 0x1a7   : > { %2062 = vrot.lane.b32.xlu1 %v661_v17, %s5810_s29  ;;  %v1118_v17 = vcombine.high %v1110_v56, %v5848_v53  ;;  %v709_v56 = vcombine.high %v3858_v24, %v5848_v53  ;;  %v1159_v24 = vrot.slane %v3806_v52, %v3620_v10 }
 0x1a8   : > { %v4297_v33 = vpop.permute.xlu0 %2106 }
 0x1a9   : > { %5867 = vst [vmem:[#allocation70_spill] sm:$0xff] %v4297_v33  ;;  %v4301_v63 = vpop.permute.xlu1 %1898  ;;  %v4325_v49 = vrot.slane %v1118_v17, %v3623_v11  ;;  %v710_v17 = vcombine.high %v3870_v35, %v5848_v53  ;;  %v1152_v35 = vcombine.high %v3806_v52, %v5848_v53 }
 0x1aa   : > { %5868 = vst [vmem:[#allocation71_spill] sm:$0xff] %v4301_v63  ;;  %2338 = vrot.lane.b32.xlu0 %v4294_v38, %s5869_s7  ;;  %v1117_v63 = vrot.slane %v1103_v42, %v3620_v10 }
 0x1ab   : > { %2070 = vrot.lane.b32.xlu1 %v707_v36, %s5813_s3 }
 0x1ac   : > { %v4312_v16 = vpop.permute.xlu0 %2114  ;;  %v1133_v47 = vcombine.high %v1117_v63, %v5848_v53  ;;  %v4338_v42 = vrot.slane %v1117_v63, %v3623_v11 }
 0x1ad   : > { %5870 = vst [vmem:[#allocation72_spill] sm:$0xff] %v4312_v16  ;;  %v4316_v33 = vpop.permute.xlu1 %1902 }
 0x1ae   : > { %5871 = vst [vmem:[#allocation73_spill] sm:$0xff] %v4316_v33  ;;  %2346 = vrot.lane.b32.xlu0 %v4304_v40, %s5872_s11 }
 0x1af   : > { %2078 = vrot.lane.b32.xlu1 %v708_v12, %s5816_s27 }
 0x1b0   : > { %v4322_v36 = vpop.permute.xlu0 %2122 }
 0x1b1   : > { %5873 = vst [vmem:[#allocation74_spill] sm:$0xff] %v4322_v36  ;;  %v4329_v16 = vpop.permute.xlu1 %1906 }
 0x1b2   : > { %5874 = vst [vmem:[#allocation75_spill] sm:$0xff] %v4329_v16  ;;  %2354 = vrot.lane.b32.xlu0 %v4325_v49, %s5875_s21  ;;  %v4352_v16 = vrot.slane %v1133_v47, %v3623_v11 }
 0x1b3   : > { %2086 = vrot.lane.b32.xlu1 %v709_v56, %s5819_s4 }
 0x1b4   : > { %v4335_v12 = vpop.permute.xlu0 %2130 }
 0x1b5   : > { %5876 = vst [vmem:[#allocation76_spill] sm:$0xff] %v4335_v12  ;;  %v4340_v33 = vpop.permute.xlu1 %1910 }
 0x1b6   : > { %5877 = vst [vmem:[#allocation77_spill] sm:$0xff] %v4340_v33  ;;  %2362 = vrot.lane.b32.xlu0 %v4338_v42, %s5878_s6  ;;  %v756_v33 = vcombine.high %v3882_v48, %v5848_v53  ;;  %v757_v48 = vcombine.high %v3893_v55, %v5848_v53 }
 0x1b7   : > { %2094 = vrot.lane.b32.xlu1 %v710_v17, %s5822_s28  ;;  %v1167_v17 = vcombine.high %v1159_v24, %v5848_v53 }
 0x1b8   : > { %v4349_v56 = vpop.permute.xlu0 %2138 }
 0x1b9   : > { %5879 = vst [vmem:[#allocation78_spill] sm:$0xff] %v4349_v56  ;;  %v4354_v63 = vpop.permute.xlu1 %1914  ;;  %v4365_v56 = vrot.slane %v1159_v24, %v3623_v11  ;;  %v4380_v36 = vrot.slane %v1167_v17, %v3623_v11 }
 0x1ba   : > { %5880 = vst [vmem:[#allocation79_spill] sm:$0xff] %v4354_v63  ;;  %2370 = vrot.lane.b32.xlu0 %v4352_v16, %s5881_s1 }
 0x1bb   : > { %2102 = vrot.lane.b32.xlu1 %v756_v33, %s5882_s19  ;;  %v1166_v33 = vrot.slane %v1152_v35, %v3620_v10  ;;  %v1208_v35 = vrot.slane %v3817_v58, %v3620_v10 }
 0x1bc   : > { %v4367_v47 = vpop.permute.xlu0 %2146 }
 0x1bd   : > { %5883 = vst [vmem:[#allocation80_spill] sm:$0xff] %v4367_v47  ;;  %v4369_v12 = vpop.permute.xlu1 %1918  ;;  %v758_v47 = vcombine.high %v3903_v62, %v5848_v53  ;;  %v1182_v55 = vcombine.high %v1166_v33, %v5848_v53  ;;  %v4395_v17 = vrot.slane %v1166_v33, %v3623_v11  ;;  %v759_v62 = vcombine.high %v3915_v9, %v5848_v53 }
 0x1be   : > { %5884 = vst [vmem:[#allocation81_spill] sm:$0xff] %v4369_v12  ;;  %2378 = vrot.lane.b32.xlu0 %v4365_v56, %s5885_s24  ;;  %v1216_v27 = vcombine.high %v1208_v35, %v5848_v53  ;;  %v4408_v19 = vrot.slane %v1208_v35, %v3623_v11  ;;  %v805_v9 = vcombine.high %v3925_v31, %v5848_v53 }
 0x1bf   : > { %2110 = vrot.lane.b32.xlu1 %v757_v48, %s5827_s17  ;;  %v806_v31 = vcombine.high %v3942_v44, %v5848_v53  ;;  %v1257_v44 = vrot.slane %v3831_v3, %v3620_v10 }
 0x1c0   : > { %v4377_v52 = vpop.permute.xlu0 %2154  ;;  %v4424_v35 = vrot.slane %v1216_v27, %v3623_v11 }
 0x1c1   : > { %5886 = vst [vmem:[#allocation82_spill] sm:$0xff] %v4377_v52  ;;  %v4382_v24 = vpop.permute.xlu1 %1922 }
 0x1c2   : > { %5887 = vst [vmem:[#allocation83_spill] sm:$0xff] %v4382_v24  ;;  %2386 = vrot.lane.b32.xlu0 %v4380_v36, %s5845_s18 }
 0x1c3   : > { %2118 = vrot.lane.b32.xlu1 %v758_v47, %s5830_s22  ;;  %v1201_v47 = vcombine.high %v3817_v58, %v5848_v53 }
 0x1c4   : > { %v4392_v48 = vpop.permute.xlu0 %2162 }
 0x1c5   : > { %v4397_v52 = vpop.permute.xlu1 %1926  ;;  %v1215_v58 = vrot.slane %v1201_v47, %v3620_v10 }
 0x1c6   : > { %5888 = vst [vmem:[#allocation84_spill] sm:$0xff] %v4397_v52  ;;  %2394 = vrot.lane.b32.xlu0 %v4395_v17, %s5850_s25  ;;  %v4413_v52 = vrot.slane %v1182_v55, %v3623_v11  ;;  %v1246_v55 = vcombine.high %v4408_v19, %v5848_v53 }
 0x1c7   : > { %2126 = vrot.lane.b32.xlu1 %v759_v62, %s5833_s15  ;;  %v4438_v47 = vrot.slane %v1215_v58, %v3623_v11 }
 0x1c8   : > { %v4410_v33 = vpop.permute.xlu0 %2170 }
 0x1c9   : > { %v4415_v24 = vpop.permute.xlu1 %1930 }
 0x1ca   : > { %5889 = vst [vmem:[#allocation85_spill] sm:$0xff] %v4415_v24  ;;  %2402 = vrot.lane.b32.xlu0 %v4413_v52, %s5854_s0  ;;  %v1247_v24 = vcombine.high %v4424_v35, %v5848_v53 }
 0x1cb   : > { %2134 = vrot.lane.b32.xlu1 %v805_v9, %s5836_s12  ;;  %v1231_v9 = vcombine.high %v1215_v58, %v5848_v53  ;;  %v1248_v58 = vcombine.high %v4438_v47, %v5848_v53 }
 0x1cc   : > { %v4426_v62 = vpop.permute.xlu0 %2178 }
 0x1cd   : > { %5890 = vst [vmem:[#allocation86_spill] sm:$0xff] %v4426_v62  ;;  %v4430_v41 = vpop.permute.xlu1 %1934 }
 0x1ce   : > { %5891 = vst [vmem:[#allocation87_spill] sm:$0xff] %v4430_v41  ;;  %2410 = vrot.lane.b32.xlu0 %v1246_v55, %s5799_s16  ;;  %v807_v41 = vcombine.high %v3958_v0, %v5848_v53  ;;  %v808_v0 = vcombine.high %v3975_v61, %v5848_v53 }
 0x1cf   : > { %2142 = vrot.lane.b32.xlu1 %v806_v31, %s5839_s5  ;;  %v4457_v31 = vrot.slane %v1231_v9, %v3623_v11 }
 0x1d0   : > { %v4440_v27 = vpop.permute.xlu0 %2186 }
 0x1d1   : > { %5892 = vst [vmem:[#allocation88_spill] sm:$0xff] %v4440_v27  ;;  %v4444_v12 = vpop.permute.xlu1 %1938  ;;  %v1249_v9 = vcombine.high %v4457_v31, %v5848_v53 }
 0x1d2   : > { %5893 = vst [vmem:[#allocation89_spill] sm:$0xff] %v4444_v12  ;;  %2418 = vrot.lane.b32.xlu0 %v1247_v24, %s5803_s13  ;;  %v1265_v24 = vcombine.high %v1257_v44, %v5848_v53  ;;  %v4469_v12 = vrot.slane %v1257_v44, %v3623_v11 }
 0x1d3   : > { %2150 = vrot.lane.b32.xlu1 %v807_v41, %s5894_s9  ;;  %v1250_v41 = vcombine.high %v3831_v3, %v5848_v53 }
 0x1d4   : > { %v4452_v55 = vpop.permute.xlu0 %2194  ;;  %v4482_v3 = vrot.slane %v1265_v24, %v3623_v11  ;;  %v1295_v44 = vcombine.high %v4469_v12, %v5848_v53 }
 0x1d5   : > { %5895 = vst [vmem:[#allocation90_spill] sm:$0xff] %v4452_v55  ;;  %v4459_v27 = vpop.permute.xlu1 %1942  ;;  %v1264_v61 = vrot.slane %v1250_v41, %v3620_v10 }
 0x1d6   : > { %5896 = vst [vmem:[#allocation91_spill] sm:$0xff] %v4459_v27  ;;  %2426 = vrot.lane.b32.xlu0 %v1248_v58, %s5806_s2  ;;  %v1296_v24 = vcombine.high %v4482_v3, %v5848_v53 }
 0x1d7   : > { %2158 = vrot.lane.b32.xlu1 %v808_v0, %s5844_s26 }
 0x1d8   : > { %v4471_v55 = vpop.permute.xlu0 %2202 }
 0x1d9   : > { %5897 = vst [vmem:[#allocation92_spill] sm:$0xff] %v4471_v55  ;;  %v4475_v27 = vpop.permute.xlu1 %1946 }
 0x1da   : > { %5898 = vst [vmem:[#allocation93_spill] sm:$0xff] %v4475_v27  ;;  %2434 = vrot.lane.b32.xlu0 %v1249_v9, %s5810_s29  ;;  %v1280_v9 = vcombine.high %v1264_v61, %v5848_v53 }
 0x1db   : > { %2166 = vrot.lane.b32.xlu1 %v3986_v59, %s5849_s30  ;;  %v4495_v59 = vrot.slane %v1264_v61, %v3623_v11 }
 0x1dc   : > { %v4484_v58 = vpop.permute.xlu0 %2210 }
 0x1dd   : > { %5899 = vst [vmem:[#allocation94_spill] sm:$0xff] %v4484_v58  ;;  %v4488_v0 = vpop.permute.xlu1 %1950  ;;  %v1297_v61 = vcombine.high %v4495_v59, %v5848_v53 }
 0x1de   : > { %5900 = vst [vmem:[#allocation95_spill] sm:$0xff] %v4488_v0  ;;  %2442 = vrot.lane.b32.xlu0 %v1295_v44, %s5813_s3 }
 0x1df   : > { %2174 = vrot.lane.b32.xlu1 %v4000_v18, %s5853_s23  ;;  %v1306_v18 = vrot.slane %v3844_v15, %v3620_v10 }
 0x1e0   : > { %v4497_v41 = vpop.permute.xlu0 %2218 }
 0x1e1   : > { %5901 = vst [vmem:[#allocation96_spill] sm:$0xff] %v4497_v41  ;;  %v4501_v58 = vpop.permute.xlu1 %1954  ;;  %v4513_v41 = vrot.slane %v1280_v9, %v3623_v11 }
 0x1e2   : > { %5902 = vst [vmem:[#allocation97_spill] sm:$0xff] %v4501_v58  ;;  %2450 = vrot.lane.b32.xlu0 %v1296_v24, %s5816_s27  ;;  %v1314_v24 = vcombine.high %v1306_v18, %v5848_v53 }
 0x1e3   : > { %2182 = vrot.lane.b32.xlu1 %v4018_v14, %s5857_s14  ;;  %v1299_v14 = vcombine.high %v3844_v15, %v5848_v53  ;;  %v1298_v9 = vcombine.high %v4513_v41, %v5848_v53 }
 0x1e4   : > { %v4508_v44 = vpop.permute.xlu0 %2226  ;;  %v4537_v15 = vrot.slane %v1314_v24, %v3623_v11 }
 0x1e5   : > { %5903 = vst [vmem:[#allocation98_spill] sm:$0xff] %v4508_v44  ;;  %v4515_v0 = vpop.permute.xlu1 %1958  ;;  %v4524_v44 = vrot.slane %v1306_v18, %v3623_v11 }
 0x1e6   : > { %5904 = vst [vmem:[#allocation99_spill] sm:$0xff] %v4515_v0  ;;  %2458 = vrot.lane.b32.xlu0 %v1297_v61, %s5819_s4  ;;  %v1051_v0 = vcombine.high %v4209_v34, %v5848_v53  ;;  %v1052_v34 = vcombine.high %v4221_v6, %v5848_v53  ;;  %v1053_v6 = vcombine.high %v4238_v5, %v5848_v53 }
 0x1e7   : > { %2190 = vrot.lane.b32.xlu1 %v4028_v21, %s5860_s10  ;;  %v1313_v21 = vrot.slane %v1299_v14, %v3620_v10  ;;  %v1344_v18 = vcombine.high %v4524_v44, %v5848_v53  ;;  %v1345_v14 = vcombine.high %v4537_v15, %v5848_v53 }
 0x1e8   : > { %v4526_v58 = vpop.permute.xlu0 %2234 }
 0x1e9   : > { %5905 = vst [vmem:[#allocation100_spill] sm:$0xff] %v4526_v58  ;;  %v4530_v55 = vpop.permute.xlu1 %1966 }
 0x1ea   : > { %5906 = vst [vmem:[#allocation101_spill] sm:$0xff] %v4530_v55  ;;  %2466 = vrot.lane.b32.xlu0 %v1298_v9, %s5822_s28  ;;  %v1329_v9 = vcombine.high %v1313_v21, %v5848_v53 }
 0x1eb   : > { %2198 = vrot.lane.b32.xlu1 %v4043_v51, %s5863_s20  ;;  %v4550_v51 = vrot.slane %v1313_v21, %v3623_v11 }
 0x1ec   : > { %v4539_v61 = vpop.permute.xlu0 %2242  ;;  %v4566_v21 = vrot.slane %v1329_v9, %v3623_v11 }
 0x1ed   : > { %5907 = vst [vmem:[#allocation102_spill] sm:$0xff] %v4539_v61  ;;  %v4543_v58 = vpop.permute.xlu1 %1974 }
 0x1ee   : > { %5908 = vst [vmem:[#allocation103_spill] sm:$0xff] %v4543_v58  ;;  %2474 = vrot.lane.b32.xlu0 %v1344_v18, %s5882_s19  ;;  %v1346_v18 = vcombine.high %v4550_v51, %v5848_v53  ;;  %v1347_v9 = vcombine.high %v4566_v21, %v5848_v53 }
 0x1ef   : > { %2206 = vrot.lane.b32.xlu1 %v4056_v25, %s5866_s8  ;;  %v1355_v25 = vrot.slane %v3860_v28, %v3620_v10 }
 0x1f0   : > { %v4554_v24 = vpop.permute.xlu0 %2250 }
 0x1f1   : > { %5909 = vst [vmem:[#allocation104_spill] sm:$0xff] %v4554_v24  ;;  %v4556_v61 = vpop.permute.xlu1 %1982 }
 0x1f2   : > { %5910 = vst [vmem:[#allocation105_spill] sm:$0xff] %v4556_v61  ;;  %2482 = vrot.lane.b32.xlu0 %v1345_v14, %s5827_s17  ;;  %v1363_v14 = vcombine.high %v1355_v25, %v5848_v53  ;;  %v4579_v61 = vrot.slane %v1355_v25, %v3623_v11 }
 0x1f3   : > { %2214 = vrot.lane.b32.xlu1 %v4074_v57, %s5869_s7  ;;  %v1348_v57 = vcombine.high %v3860_v28, %v5848_v53 }
 0x1f4   : > { %v4571_v24 = vpop.permute.xlu0 %2258  ;;  %v1393_v28 = vcombine.high %v4579_v61, %v5848_v53 }
 0x1f5   : > { %v4568_v58 = vpop.permute.xlu1 %1990  ;;  %5912 = vst [vmem:[#allocation107_spill] sm:$0xff] %v4571_v24 }
 0x1f6   : > { %5911 = vst [vmem:[#allocation106_spill] sm:$0xff] %v4568_v58  ;;  %2490 = vrot.lane.b32.xlu0 %v1346_v18, %s5830_s22  ;;  %v4590_v18 = vrot.slane %v1363_v14, %v3623_v11 }
 0x1f7   : > { %2222 = vrot.lane.b32.xlu1 %v4086_v20, %s5872_s11  ;;  %v1362_v20 = vrot.slane %v1348_v57, %v3620_v10 }
 0x1f8   : > { %v4594_v25 = vpop.permute.xlu0 %2266  ;;  %v1394_v57 = vcombine.high %v4590_v18, %v5848_v53 }
 0x1f9   : > { %v4583_v55 = vpop.permute.xlu1 %1998  ;;  %5914 = vst [vmem:[#allocation109_spill] sm:$0xff] %v4594_v25 }
 0x1fa   : > { %5913 = vst [vmem:[#allocation108_spill] sm:$0xff] %v4583_v55  ;;  %2498 = vrot.lane.b32.xlu0 %v1347_v9, %s5833_s15  ;;  %v1378_v9 = vcombine.high %v1362_v20, %v5848_v53 }
 0x1fb   : > { %2230 = vrot.lane.b32.xlu1 %v4099_v2, %s5875_s21  ;;  %v4603_v2 = vrot.slane %v1362_v20, %v3623_v11 }
 0x1fc   : > { %v4610_v25 = vpop.permute.xlu0 %2274 }
 0x1fd   : > { %v4596_v24 = vpop.permute.xlu1 %2006  ;;  %5917 = vst [vmem:[#allocation112_spill] sm:$0xff] %v4610_v25  ;;  %v1395_v20 = vcombine.high %v4603_v2, %v5848_v53 }
 0x1fe   : > { %5915 = vst [vmem:[#allocation110_spill] sm:$0xff] %v4596_v24  ;;  %2506 = vrot.lane.b32.xlu0 %v1393_v28, %s5836_s12  ;;  %v4621_v28 = vrot.slane %v1378_v9, %v3623_v11 }
 0x1ff   : > { %2238 = vrot.lane.b32.xlu1 %v4111_v4, %s5878_s6  ;;  %v4616_v4 = vrot.slane %v3873_v37, %v3620_v10 }
 0x200   : > { %v1396_v25 = vcombine.high %v4621_v28, %v5848_v53 }
 0x201   : > { %v4607_v14 = vpop.permute.xlu1 %2014 }
 0x202   : > { %5916 = vst [vmem:[#allocation111_spill] sm:$0xff] %v4607_v14  ;;  %2514 = vrot.lane.b32.xlu0 %v1394_v57, %s5839_s5  ;;  %v1412_v57 = vcombine.high %v4616_v4, %v5848_v53  ;;  %v4634_v14 = vpop.permute.xlu0 %2282 }
 0x203   : > { %2246 = vrot.lane.b32.xlu1 %v4128_v22, %s5881_s1  ;;  %v1397_v22 = vcombine.high %v3873_v37, %v5848_v53  ;;  %5919 = vst [vmem:[#allocation114_spill] sm:$0xff] %v4634_v14 }
 0x205   : > { %v4623_v24 = vpop.permute.xlu1 %2022 }
 0x206   : > { %5918 = vst [vmem:[#allocation113_spill] sm:$0xff] %v4623_v24  ;;  %2522 = vrot.lane.b32.xlu0 %v1395_v20, %s5894_s9  ;;  %v4643_v20 = vrot.slane %v1412_v57, %v3623_v11  ;;  %v4649_v24 = vpop.permute.xlu0 %2290 }
 0x207   : > { %2254 = vrot.lane.b32.xlu1 %v4140_v32, %s5885_s24  ;;  %v1411_v32 = vrot.slane %v1397_v22, %v3620_v10 }
 0x209   : > { %v4636_v9 = vpop.permute.xlu1 %2030  ;;  %v4655_v14 = vrot.slane %v1411_v32, %v3623_v11 }
 0x20a   : > { %5920 = vst [vmem:[#allocation115_spill] sm:$0xff] %v4636_v9  ;;  %2530 = vrot.lane.b32.xlu0 %v1396_v25, %s5844_s26  ;;  %v1427_v25 = vcombine.high %v1411_v32, %v5848_v53  ;;  %v4672_v32 = vpop.permute.xlu0 %2298 }
 0x20b   : > { %2262 = vrot.lane.b32.xlu1 %v4153_v29, %s5845_s18  ;;  %v4659_v29 = vrot.slane %v4179_v45, %v3623_v11 }
 0x20c   : > { %v4670_v57 = vrot.slane %v1427_v25, %v3623_v11 }
 0x20d   : > { %v4645_v37 = vpop.permute.xlu1 %2038  ;;  %v1050_v45 = vcombine.high %v4659_v29, %v5848_v53 }
 0x20e   : > { %2538 = vrot.lane.b32.xlu0 %v4643_v20, %s5849_s30  ;;  %v4693_v27 = vpop.permute.xlu0 %2306 }
 0x20f   : > { %2270 = vrot.lane.b32.xlu1 %v4166_v30, %s5850_s25  ;;  %v1453_v30 = vrot.slane %v3895_v54, %v3620_v10 }
 0x211   : > { %v4661_v22 = vpop.permute.xlu1 %2046  ;;  %v1461_v55 = vcombine.high %v1453_v30, %v5848_v53  ;;  %v4685_v25 = vrot.slane %v1453_v30, %v3623_v11 }
 0x212   : > { %5921 = vst [vmem:[#allocation116_spill] sm:$0xff] %v4661_v22  ;;  %2546 = vrot.lane.b32.xlu0 %v4655_v14, %s5853_s23  ;;  %v4721_v63 = vpop.permute.xlu0 %2314 }
 0x213   : > { %2278 = vrot.lane.b32.xlu1 %v4185_v7, %s5854_s0  ;;  %v1446_v7 = vcombine.high %v3895_v54, %v5848_v53  ;;  %v4701_v54 = vrot.slane %v3947_v50, %v3620_v10  ;;  %v4704_v30 = vrot.slane %v1461_v55, %v3623_v11 }
 0x215   : > { %v4674_v9 = vpop.permute.xlu1 %2054 }
 0x216   : > { %5922 = vst [vmem:[#allocation117_spill] sm:$0xff] %v4674_v9  ;;  %2554 = vrot.lane.b32.xlu0 %v4670_v57, %s5857_s14 }
 0x217   : > { %2286 = vrot.lane.b32.xlu1 %v1050_v45, %s5799_s16  ;;  %v4697_v45 = vrot.slane %v1446_v7, %v3620_v10  ;;  %v1608_v7 = vcombine.high %v4701_v54, %v5848_v53 }
 0x219   : > { %v4687_v58 = vpop.permute.xlu1 %2062  ;;  %v4719_v55 = vrot.slane %v4697_v45, %v3623_v11 }
 0x21a   : > { %5923 = vst [vmem:[#allocation118_spill] sm:$0xff] %v4687_v58  ;;  %2562 = vrot.lane.b32.xlu0 %v4685_v25, %s5860_s10 }
 0x21b   : > { %2294 = vrot.lane.b32.xlu1 %v1051_v0, %s5803_s13  ;;  %v1593_v0 = vcombine.high %v3947_v50, %v5848_v53 }
 0x21d   : > { %v4706_v58 = vpop.permute.xlu1 %2070  ;;  %v1607_v50 = vrot.slane %v1593_v0, %v3620_v10 }
 0x21e   : > { %5924 = vst [vmem:[#allocation119_spill] sm:$0xff] %v4706_v58  ;;  %2570 = vrot.lane.b32.xlu0 %v4704_v30, %s5863_s20 }
 0x21f   : > { %2302 = vrot.lane.b32.xlu1 %v1052_v34, %s5806_s2  ;;  %v4732_v34 = vrot.slane %v1608_v7, %v3623_v11  ;;  %v1623_v5 = vcombine.high %v1607_v50, %v5848_v53  ;;  %v1100_v7 = vcombine.high %v4267_v39, %v5848_v53  ;;  %v1642_v39 = vcombine.high %v3977_v43, %v5848_v53 }
 0x221   : > { %v4723_v58 = vpop.permute.xlu1 %2078 }
 0x222   : > { %5925 = vst [vmem:[#allocation120_spill] sm:$0xff] %v4723_v58  ;;  %2578 = vrot.lane.b32.xlu0 %v4719_v55, %s5866_s8  ;;  %v4740_v58 = vpop.permute.xlu0 %2322 }
 0x223   : > { %2310 = vrot.lane.b32.xlu1 %v1053_v6, %s5810_s29  ;;  %v4745_v6 = vrot.slane %v1607_v50, %v3623_v11 }
 0x225   : > { %v4734_v9 = vpop.permute.xlu1 %2086 }
 0x226   : > { %5926 = vst [vmem:[#allocation121_spill] sm:$0xff] %v4734_v9  ;;  %2662 = vrot.lane.b32.xlu0 %v4732_v34, %s5849_s30  ;;  %v4759_v9 = vpop.permute.xlu0 %2330 }
 0x227   : > { %2318 = vrot.lane.b32.xlu1 %v1099_v46, %s5813_s3  ;;  %v4757_v46 = vrot.slane %v1623_v5, %v3623_v11  ;;  %v4772_v5 = vrot.slane %v1649_v13, %v3623_v11 }
 0x229   : > { %v4747_v0 = vpop.permute.xlu1 %2094 }
 0x22a   : > { %5927 = vst [vmem:[#allocation122_spill] sm:$0xff] %v4747_v0  ;;  %2670 = vrot.lane.b32.xlu0 %v4745_v6, %s5853_s23  ;;  %v1101_v0 = vcombine.high %v4280_v60, %v5848_v53  ;;  %v4780_v60 = vpop.permute.xlu0 %2338 }
 0x22b   : > { %2326 = vrot.lane.b32.xlu1 %v1100_v7, %s5816_s27  ;;  %v1657_v7 = vcombine.high %v1649_v13, %v5848_v53  ;;  %v1148_v13 = vcombine.high %v4304_v40, %v5848_v53 }
 0x22d   : > { %v4761_v50 = vpop.permute.xlu1 %2102  ;;  %v4785_v43 = vrot.slane %v1657_v7, %v3623_v11 }
 0x22e   : > { %5928 = vst [vmem:[#allocation123_spill] sm:$0xff] %v4761_v50  ;;  %2678 = vrot.lane.b32.xlu0 %v4757_v46, %s5857_s14  ;;  %v1102_v50 = vcombine.high %v4294_v38, %v5848_v53 }
 0x22f   : > { %2334 = vrot.lane.b32.xlu1 %v1101_v0, %s5819_s4  ;;  %v1656_v0 = vrot.slane %v1642_v39, %v3620_v10  ;;  %v1149_v39 = vcombine.high %v4325_v49, %v5848_v53 }
 0x231   : > { %v4774_v62 = vpop.permute.xlu1 %2110  ;;  %v1679_v38 = vrot.slane %v1656_v0, %v3623_v11  ;;  %v1672_v40 = vcombine.high %v1656_v0, %v5848_v53  ;;  %v1151_v0 = vcombine.high %v4352_v16, %v5848_v53 }
 0x232   : > { %5929 = vst [vmem:[#allocation124_spill] sm:$0xff] %v4774_v62  ;;  %2686 = vrot.lane.b32.xlu0 %v4772_v5, %s5860_s10  ;;  %v4795_v62 = vpop.permute.xlu0 %2346 }
 0x233   : > { %2342 = vrot.lane.b32.xlu1 %v1102_v50, %s5822_s28  ;;  %v1689_v7 = vcombine.high %v1679_v38, %v5848_v53  ;;  %v1686_v49 = vrot.slane %v1672_v40, %v3623_v11  ;;  %v1197_v40 = vcombine.high %v4365_v56, %v5848_v53 }
 0x235   : > { %v4787_v22 = vpop.permute.xlu1 %2118 }
 0x236   : > { %5930 = vst [vmem:[#allocation125_spill] sm:$0xff] %v4787_v22  ;;  %2694 = vrot.lane.b32.xlu0 %v4785_v43, %s5863_s20  ;;  %v4810_v1 = vpop.permute.xlu0 %2354 }
 0x237   : > { %2350 = vrot.lane.b32.xlu1 %v1148_v13, %s5882_s19  ;;  %v1150_v13 = vcombine.high %v4338_v42, %v5848_v53  ;;  %v1698_v42 = vrot.slane %v3993_v8, %v3620_v10 }
 0x239   : > { %v4797_v50 = vpop.permute.xlu1 %2126  ;;  %v1713_v16 = vrot.slane %v1698_v42, %v3623_v11 }
 0x23a   : > { %5931 = vst [vmem:[#allocation126_spill] sm:$0xff] %v4797_v50  ;;  %2702 = vrot.lane.b32.xlu0 %v1679_v38, %s5866_s8  ;;  %v1690_v38 = vcombine.high %v1686_v49, %v5848_v53 }
 0x23b   : > { %2358 = vrot.lane.b32.xlu1 %v1149_v39, %s5827_s17  ;;  %v4823_v39 = vpop.permute.xlu0 %2362  ;;  %v1736_v56 = vcombine.high %v1713_v16, %v5848_v53 }
 0x23d   : > { %v4805_v22 = vpop.permute.xlu1 %2134 }
 0x23e   : > { %5932 = vst [vmem:[#allocation127_spill] sm:$0xff] %v4805_v22  ;;  %2706 = vrot.lane.b32.xlu0 %v1689_v7, %s5819_s4 }
 0x23f   : > { %2366 = vrot.lane.b32.xlu1 %v1150_v13, %s5830_s22 }
 0x241   : > { %v4814_v50 = vpop.permute.xlu1 %2142 }
 0x242   : > { %5933 = vst [vmem:[#allocation128_spill] sm:$0xff] %v4814_v50  ;;  %2710 = vrot.lane.b32.xlu0 %v1686_v49, %s5869_s7  ;;  %v4837_v49 = vpop.permute.xlu0 %2370 }
 0x243   : > { %2374 = vrot.lane.b32.xlu1 %v1151_v0, %s5833_s15  ;;  %v1198_v0 = vcombine.high %v4380_v36, %v5848_v53  ;;  %v1691_v36 = vcombine.high %v3993_v8, %v5848_v53 }
 0x245   : > { %v4825_v7 = vpop.permute.xlu1 %2150 }
 0x246   : > { %5934 = vst [vmem:[#allocation129_spill] sm:$0xff] %v4825_v7  ;;  %2714 = vrot.lane.b32.xlu0 %v1690_v38, %s5822_s28  ;;  %v1706_v7 = vcombine.high %v1698_v42, %v5848_v53  ;;  %v4851_v50 = vpop.permute.xlu0 %2378  ;;  %v1200_v42 = vcombine.high %v4413_v52, %v5848_v53 }
 0x247   : > { %2382 = vrot.lane.b32.xlu1 %v1197_v40, %s5836_s12  ;;  %v1199_v40 = vcombine.high %v4395_v17, %v5848_v53  ;;  %v1705_v17 = vrot.slane %v1691_v36, %v3620_v10 }
 0x249   : > { %v4832_v13 = vpop.permute.xlu1 %2158 }
 0x24a   : > { %5935 = vst [vmem:[#allocation130_spill] sm:$0xff] %v4832_v13  ;;  %2718 = vrot.lane.b32.xlu0 %v1713_v16, %s5872_s11  ;;  %v1720_v13 = vrot.slane %v1706_v7, %v3623_v11  ;;  %v4864_v8 = vpop.permute.xlu0 %2386  ;;  %v1728_v7 = vrot.slane %v1705_v17, %v3623_v11 }
 0x24b   : > { %2390 = vrot.lane.b32.xlu1 %v1198_v0, %s5839_s5 }
 0x24c   : > { %v1737_v16 = vcombine.high %v1720_v13, %v5848_v53 }
 0x24d   : > { %v4842_v38 = vpop.permute.xlu1 %2166 }
 0x24e   : > { %2722 = vrot.lane.b32.xlu0 %v1736_v56, %s5882_s19  ;;  %v4876_v36 = vpop.permute.xlu0 %2394 }
 0x24f   : > { %2398 = vrot.lane.b32.xlu1 %v1199_v40, %s5894_s9  ;;  %v1738_v40 = vcombine.high %v1728_v7, %v5848_v53 }
 0x251   : > { %v4853_v0 = vpop.permute.xlu1 %2174 }
 0x252   : > { %2726 = vrot.lane.b32.xlu0 %v1720_v13, %s5875_s21  ;;  %v1721_v13 = vcombine.high %v1705_v17, %v5848_v53  ;;  %v1747_v17 = vrot.slane %v4013_v23, %v3620_v10 }
 0x253   : > { %2406 = vrot.lane.b32.xlu1 %v1200_v42, %s5844_s26 }
 0x255   : > { %v4861_v56 = vpop.permute.xlu1 %2182 }
 0x256   : > { %2730 = vrot.lane.b32.xlu0 %v1737_v16, %s5827_s17 }
 0x257   : > { %2414 = vrot.lane.b32.xlu1 %v4424_v35, %s5849_s30  ;;  %v1735_v35 = vrot.slane %v1721_v13, %v3623_v11 }
 0x259   : > { %v4869_v52 = vpop.permute.xlu1 %2190 }
 0x25a   : > { %2734 = vrot.lane.b32.xlu0 %v1728_v7, %s5878_s6  ;;  %v1739_v7 = vcombine.high %v1735_v35, %v5848_v53 }
 0x25b   : > { %2422 = vrot.lane.b32.xlu1 %v4438_v47, %s5853_s23  ;;  %v4887_v47 = vpop.permute.xlu0 %2402 }
 0x25d   : > { %v4878_v42 = vpop.permute.xlu1 %2198 }
 0x25e   : > { %2738 = vrot.lane.b32.xlu0 %v1738_v40, %s5830_s22 }
 0x25f   : > { %2430 = vrot.lane.b32.xlu1 %v4457_v31, %s5857_s14  ;;  %v1762_v31 = vrot.slane %v1747_v17, %v3623_v11  ;;  %v4900_v13 = vpop.permute.xlu0 %2410 }
 0x261   : > { %v4884_v16 = vpop.permute.xlu1 %2206 }
 0x262   : > { %5936 = vst [vmem:[#allocation131_spill] sm:$0xff] %v4884_v16  ;;  %2742 = vrot.lane.b32.xlu0 %v1735_v35, %s5881_s1  ;;  %v1785_v35 = vcombine.high %v1762_v31, %v5848_v53 }
 0x263   : > { %2438 = vrot.lane.b32.xlu1 %v4469_v12, %s5860_s10  ;;  %v1755_v12 = vcombine.high %v1747_v17, %v5848_v53 }
 0x265   : > { %v4894_v40 = vpop.permute.xlu1 %2214 }
 0x266   : > { %5937 = vst [vmem:[#allocation132_spill] sm:$0xff] %v4894_v40  ;;  %2746 = vrot.lane.b32.xlu0 %v1739_v7, %s5833_s15  ;;  %v1740_v7 = vcombine.high %v4013_v23, %v5848_v53 }
 0x267   : > { %2446 = vrot.lane.b32.xlu1 %v4482_v3, %s5863_s20  ;;  %v4912_v3 = vpop.permute.xlu0 %2418 }
 0x269   : > { %v4902_v22 = vpop.permute.xlu1 %2222 }
 0x26a   : > { %5938 = vst [vmem:[#allocation133_spill] sm:$0xff] %v4902_v22  ;;  %2750 = vrot.lane.b32.xlu0 %v1762_v31, %s5885_s24  ;;  %v1769_v22 = vrot.slane %v1755_v12, %v3623_v11 }
 0x26b   : > { %2454 = vrot.lane.b32.xlu1 %v4495_v59, %s5866_s8  ;;  %v1754_v59 = vrot.slane %v1740_v7, %v3620_v10  ;;  %v4926_v31 = vpop.permute.xlu0 %2426 }
 0x26c   : > { %v1786_v17 = vcombine.high %v1769_v22, %v5848_v53 }
 0x26d   : > { %v4909_v40 = vpop.permute.xlu1 %2230  ;;  %v1777_v23 = vrot.slane %v1754_v59, %v3623_v11 }
 0x26e   : > { %2754 = vrot.lane.b32.xlu0 %v1785_v35, %s5836_s12 }
 0x26f   : > { %2462 = vrot.lane.b32.xlu1 %v4513_v41, %s5869_s7  ;;  %v1787_v12 = vcombine.high %v1777_v23, %v5848_v53 }
 0x271   : > { %v4919_v16 = vpop.permute.xlu1 %2238 }
 0x272   : > { %2758 = vrot.lane.b32.xlu0 %v1769_v22, %s5845_s18  ;;  %v1770_v22 = vcombine.high %v1754_v59, %v5848_v53 }
 0x273   : > { %2470 = vrot.lane.b32.xlu1 %v4524_v44, %s5872_s11  ;;  %v4937_v44 = vpop.permute.xlu0 %2434 }
 0x275   : > { %v4928_v35 = vpop.permute.xlu1 %2246 }
 0x276   : > { %2762 = vrot.lane.b32.xlu0 %v1786_v17, %s5839_s5 }
 0x277   : > { %2478 = vrot.lane.b32.xlu1 %v4537_v15, %s5875_s21  ;;  %v1784_v15 = vrot.slane %v1770_v22, %v3623_v11  ;;  %v4949_v17 = vpop.permute.xlu0 %2442 }
 0x279   : > { %v4934_v41 = vpop.permute.xlu1 %2254 }
 0x27a   : > { %5939 = vst [vmem:[#allocation134_spill] sm:$0xff] %v4934_v41  ;;  %2766 = vrot.lane.b32.xlu0 %v1777_v23, %s5850_s25 }
 0x27b   : > { %2486 = vrot.lane.b32.xlu1 %v4550_v51, %s5878_s6  ;;  %v1788_v51 = vcombine.high %v1784_v15, %v5848_v53  ;;  %v4960_v23 = vpop.permute.xlu0 %2450 }
 0x27d   : > { %v4943_v7 = vpop.permute.xlu1 %2262 }
 0x27e   : > { %2770 = vrot.lane.b32.xlu0 %v1787_v12, %s5894_s9 }
 0x27f   : > { %2494 = vrot.lane.b32.xlu1 %v4566_v21, %s5881_s1  ;;  %v4972_v12 = vpop.permute.xlu0 %2458 }
 0x281   : > { %v4951_v41 = vpop.permute.xlu1 %2270 }
 0x282   : > { %2774 = vrot.lane.b32.xlu0 %v1784_v15, %s5854_s0 }
 0x283   : > { %2502 = vrot.lane.b32.xlu1 %v4579_v61, %s5885_s24  ;;  %v4970_v61 = vrot.slane %v4616_v4, %v3623_v11 }
 0x285   : > { %v4957_v59 = vpop.permute.xlu1 %2278  ;;  %v1442_v4 = vcombine.high %v4970_v61, %v5848_v53 }
 0x286   : > { %5940 = vst [vmem:[#allocation135_spill] sm:$0xff] %v4957_v59  ;;  %2778 = vrot.lane.b32.xlu0 %v1788_v51, %s5844_s26  ;;  %v4984_v59 = vpop.permute.xlu0 %2466 }
 0x287   : > { %2510 = vrot.lane.b32.xlu1 %v4590_v18, %s5845_s18 }
 0x289   : > { %v2287_v21 = vpop.permute.xlu1 %2286 }
 0x28a   : > { %v2936_v22 = vsel %vm2781_vm0, %v4659_v29, %v2287_v21 }
 0x28b   : > { %2518 = vrot.lane.b32.xlu1 %v4603_v2, %s5850_s25  ;;  %v2937_v18 = vsel %vm2783_vm1, %v2936_v22, %v4649_v24  ;;  %v1443_v22 = vcombine.high %v4643_v20, %v5848_v53 }
 0x28d   : > { %v2295_v15 = vpop.permute.xlu1 %2294 }
 0x28e   : > { %v2938_v51 = vsel %vm2785_vm2, %v2937_v18, %v2295_v15  ;;  %v4993_v15 = vpop.permute.xlu0 %2474 }
 0x28f   : > { %2526 = vrot.lane.b32.xlu1 %v4621_v28, %s5854_s0  ;;  %v2939_v29 = vsel %vm2787_vm3, %v2938_v51, %v4672_v32 }
 0x291   : > { %v2303_v2 = vpop.permute.xlu1 %2302 }
 0x292   : > { %v2940_v21 = vsel %vm2789_vm4, %v2939_v29, %v2303_v2  ;;  %v1444_v2 = vcombine.high %v4655_v14, %v5848_v53 }
 0x293   : > { %2534 = vrot.lane.b32.xlu1 %v1442_v4, %s5799_s16  ;;  %v2941_v28 = vsel %vm2791_vm5, %v2940_v21, %v4693_v27  ;;  %v1445_v4 = vcombine.high %v4670_v57, %v5848_v53  ;;  %v5017_v57 = vrot.slane %v4701_v54, %v3623_v11 }
 0x295   : > { %v2311_v24 = vpop.permute.xlu1 %2310 }
 0x296   : > { %v2942_v32 = vsel %vm2793_vm6, %v2941_v28, %v2311_v24  ;;  %v5006_v24 = vpop.permute.xlu0 %2482  ;;  %v1491_v28 = vcombine.high %v4685_v25, %v5848_v53 }
 0x297   : > { %2542 = vrot.lane.b32.xlu1 %v1443_v22, %s5803_s13  ;;  %v2943_v51 = vsel %vm5767_vm7, %v2942_v32, %v4721_v63 }
 0x299   : > { %v2319_v18 = vpop.permute.xlu1 %2318 }
 0x29a   : > { %v2944_v27 = vsel %vm5769_vm8, %v2943_v51, %v2319_v18  ;;  %v5019_v22 = vpop.permute.xlu0 %2490 }
 0x29b   : > { %2550 = vrot.lane.b32.xlu1 %v1444_v2, %s5806_s2  ;;  %v2945_v29 = vsel %vm5768_vm9, %v2944_v27, %v4740_v58  ;;  %v1638_v2 = vcombine.high %v5017_v57, %v5848_v53 }
 0x29d   : > { %v2327_v20 = vpop.permute.xlu1 %2326 }
 0x29e   : > { %v2946_v21 = vsel %vm5770_vm10, %v2945_v29, %v2327_v20  ;;  %v5032_v20 = vpop.permute.xlu0 %2498  ;;  %v1639_v29 = vcombine.high %v4732_v34, %v5848_v53 }
 0x29f   : > { %2558 = vrot.lane.b32.xlu1 %v1445_v4, %s5810_s29  ;;  %v2947_v14 = vsel %vm5754_vm11, %v2946_v21, %v4759_v9  ;;  %v1492_v9 = vcombine.high %v4704_v30, %v5848_v53  ;;  %vm5760_vm11 = vcmask 621568  }
 0x2a1   : > { %v2335_v63 = vpop.permute.xlu1 %2334 }
 0x2a2   : > { %v2948_v58 = vsel %vm5752_vm12, %v2947_v14, %v2335_v63  ;;  %vm5758_vm12 = vcmask 556032   ;;  %v5041_v4 = vpop.permute.xlu0 %2506  ;;  %v1640_v14 = vcombine.high %v4745_v6, %v5848_v53 }
 0x2a3   : > { %2566 = vrot.lane.b32.xlu1 %v1491_v28, %s5813_s3  ;;  %v2949_v18 = vsel %vm5753_vm13, %v2948_v58, %v4780_v60  ;;  %vm5757_vm13 = vcmask 588800   ;;  %v1641_v58 = vcombine.high %v4757_v46, %v5848_v53 }
 0x2a5   : > { %v2343_v32 = vpop.permute.xlu1 %2342 }
 0x2a6   : > { %v2950_v25 = vsel %vm5756_vm14, %v2949_v18, %v2343_v32  ;;  %vm5762_vm14 = vcmask 687104   ;;  %v5054_v18 = vpop.permute.xlu0 %2514 }
 0x2a7   : > { %2574 = vrot.lane.b32.xlu1 %v1492_v9, %s5816_s27  ;;  %v2951_v54 = vsel %vm5755_vm15, %v2950_v25, %v4795_v62  ;;  %vm5759_vm15 = vcmask 654336   ;;  %v1687_v9 = vcombine.high %v4772_v5, %v5848_v53  ;;  %v1476_v5 = vcombine.high %v4697_v45, %v5848_v53 }
 0x2a9   : > { %v2351_v51 = vpop.permute.xlu1 %2350 }
 0x2aa   : > { %v2952_v27 = vsel %vm5758_vm12, %v2951_v54, %v2351_v51  ;;  %vm2825_vm12 = vcmask 752640   ;;  %v5063_v46 = vpop.permute.xlu0 %2522  ;;  %v1688_v54 = vcombine.high %v4785_v43, %v5848_v53 }
 0x2ab   : > { %2658 = vrot.lane.b32.xlu1 %v1638_v2, %s5799_s16  ;;  %v2953_v60 = vsel %vm5757_vm13, %v2952_v27, %v4810_v1  ;;  %vm5761_vm13 = vcmask 719872  }
 0x2ad   : > { %v2359_v30 = vpop.permute.xlu1 %2358 }
 0x2ae   : > { %v2954_v62 = vsel %vm5760_vm11, %v2953_v60, %v2359_v30  ;;  %vm5764_vm11 = vcmask 818176   ;;  %v1493_v30 = vcombine.high %v4719_v55, %v5848_v53  ;;  %v5078_v60 = vpop.permute.xlu0 %2530  ;;  %v5941_v55 = vld [vmem:[#allocation21_spill] sm:$0xff] }
 0x2af   : > { %2666 = vrot.lane.b32.xlu1 %v1639_v29, %s5803_s13  ;;  %v2955_v63 = vsel %vm5759_vm15, %v2954_v62, %v4823_v39  ;;  %vm5763_vm15 = vcmask 785408   ;;  %v1490_v29 = vrot.slane %v1476_v5, %v3623_v11 }
 0x2b1   : > { %v2367_v21 = vpop.permute.xlu1 %2366 }
 0x2b2   : > { %v2956_v1 = vsel %vm5762_vm14, %v2955_v63, %v2367_v21  ;;  %vm5765_vm14 = vcmask 883712   ;;  %v2967_v21 = vsel %vm2781_vm0, %v4408_v19, %v4900_v13  ;;  %v5093_v63 = vpop.permute.xlu0 %2538 }
 0x2b3   : > { %2674 = vrot.lane.b32.xlu1 %v1640_v14, %s5806_s2  ;;  %v2957_v28 = vsel %vm5761_vm13, %v2956_v1, %v4837_v49  ;;  %vm5766_vm13 = vcmask 850944   ;;  %v1494_v1 = vcombine.high %v1490_v29, %v5848_v53 }
 0x2b5   : > { %v2375_v34 = vpop.permute.xlu1 %2374 }
 0x2b6   : > { %v2958_v32 = vsel %vm2825_vm12, %v2957_v28, %v2375_v34 }
 0x2b7   : > { %2682 = vrot.lane.b32.xlu1 %v1641_v58, %s5810_s29  ;;  %v2959_v39 = vsel %vm5763_vm15, %v2958_v32, %v4851_v50  ;;  %vm2835_vm15 = vcmask 916480  }
 0x2b9   : > { %v2383_v6 = vpop.permute.xlu1 %2382 }
 0x2ba   : > { %v2960_v49 = vsel %vm5764_vm11, %v2959_v39, %v2383_v6  ;;  %vm2837_vm11 = vcmask 949248   ;;  %v5102_v6 = vpop.permute.xlu0 %2546 }
 0x2bb   : > { %2690 = vrot.lane.b32.xlu1 %v1687_v9, %s5813_s3  ;;  %v2961_v51 = vsel %vm5766_vm13, %v2960_v49, %v4864_v8  ;;  %vm2841_vm13 = vcmask 1014784  }
 0x2bd   : > { %v2391_v25 = vpop.permute.xlu1 %2390 }
 0x2be   : > { %v2962_v50 = vsel %vm5765_vm14, %v2961_v51, %v2391_v25  ;;  %vm2839_vm14 = vcmask 982016   ;;  %v5113_v25 = vpop.permute.xlu0 %2554 }
 0x2bf   : > { %2698 = vrot.lane.b32.xlu1 %v1688_v54, %s5816_s27  ;;  %v2963_v27 = vsel %vm2835_vm15, %v2962_v50, %v4876_v36  ;;  %v1502_v36 = vrot.slane %v5941_v55, %v3620_v10 }
 0x2c1   : > { %v2399_v2 = vpop.permute.xlu1 %2398  ;;  %v1517_v34 = vrot.slane %v1502_v36, %v3623_v11  ;;  %v1510_v19 = vcombine.high %v1502_v36, %v5848_v53 }
 0x2c2   : > { %v2964_v8 = vsel %vm2837_vm11, %v2963_v27, %v2399_v2 }
 0x2c3   : > { %2582 = vrot.lane.b32.xlu1 %v1493_v30, %s5819_s4  ;;  %v2965_v45 = vsel %vm2839_vm14, %v2964_v8, %v4887_v47  ;;  %v1540_v9 = vcombine.high %v1517_v34, %v5848_v53  ;;  %v1524_v50 = vrot.slane %v1510_v19, %v3623_v11 }
 0x2c5   : > { %v2407_v43 = vpop.permute.xlu1 %2406  ;;  %v1541_v30 = vcombine.high %v1524_v50, %v5848_v53 }
 0x2c6   : > { %v5085_v62 = vsel %vm2841_vm13, %v2965_v45, %v2407_v43  ;;  %v5125_v43 = vpop.permute.xlu0 %2562 }
 0x2c7   : > { %2586 = vrot.lane.b32.xlu1 %v1490_v29, %s5869_s7 }
 0x2c9   : > { %v2415_v14 = vpop.permute.xlu1 %2414 }
 0x2ca   : > { %v2968_v47 = vsel %vm2783_vm1, %v2967_v21, %v2415_v14  ;;  %v5134_v36 = vpop.permute.xlu0 %2570 }
 0x2cb   : > { %2590 = vrot.lane.b32.xlu1 %v1494_v1, %s5822_s28  ;;  %v2969_v58 = vsel %vm2785_vm2, %v2968_v47, %v4912_v3  ;;  %v1495_v3 = vcombine.high %v5941_v55, %v5848_v53 }
 0x2cd   : > { %v2423_v28 = vpop.permute.xlu1 %2422 }
 0x2ce   : > { %v2970_v32 = vsel %vm2787_vm3, %v2969_v58, %v2423_v28 }
 0x2cf   : > { %2594 = vrot.lane.b32.xlu1 %v1517_v34, %s5872_s11  ;;  %v2971_v39 = vsel %vm2789_vm4, %v2970_v32, %v4926_v31  ;;  %v1509_v31 = vrot.slane %v1495_v3, %v3620_v10  ;;  %v5145_v32 = vpop.permute.xlu0 %2578 }
 0x2d1   : > { %v2431_v13 = vpop.permute.xlu1 %2430  ;;  %v1532_v29 = vrot.slane %v1509_v31, %v3623_v11 }
 0x2d2   : > { %v2972_v49 = vsel %vm2791_vm5, %v2971_v39, %v2431_v13 }
 0x2d3   : > { %2598 = vrot.lane.b32.xlu1 %v1540_v9, %s5882_s19  ;;  %v2973_v54 = vsel %vm2793_vm6, %v2972_v49, %v4937_v44  ;;  %v1542_v1 = vcombine.high %v1532_v29, %v5848_v53  ;;  %v5156_v3 = vpop.permute.xlu0 %2662  ;;  %s6185_s19 = sld [smem:[#allocation137_spill]] }
 0x2d5   : > { %v2439_v51 = vpop.permute.xlu1 %2438 }
 0x2d6   : > { %v2974_v5 = vsel %vm5767_vm7, %v2973_v54, %v2439_v51  ;;  %vm5942_vm7 = vcmask 392192  }
 0x2d7   : > { %2602 = vrot.lane.b32.xlu1 %v1524_v50, %s5875_s21  ;;  %v2975_v27 = vsel %vm5769_vm8, %v2974_v5, %v4949_v17  ;;  %v1525_v17 = vcombine.high %v1509_v31, %v5848_v53  ;;  %vm5944_vm8 = vcmask 457728  }
 0x2d9   : > { %v2447_v2 = vpop.permute.xlu1 %2446  ;;  %v1539_v28 = vrot.slane %v1525_v17, %v3623_v11 }
 0x2da   : > { %v2976_v8 = vsel %vm5768_vm9, %v2975_v27, %v2447_v2  ;;  %vm5943_vm9 = vcmask 424960  }
 0x2db   : > { %2606 = vrot.lane.b32.xlu1 %v1541_v30, %s5827_s17  ;;  %v2977_v45 = vsel %vm5770_vm10, %v2976_v8, %v4960_v23  ;;  %vm5945_vm10 = vcmask 490496   ;;  %v1543_v9 = vcombine.high %v1539_v28, %v5848_v53  ;;  %v2671_v30 = vpop.permute.xlu0 %2670 }
 0x2dd   : > { %v2455_v44 = vpop.permute.xlu1 %2454 }
 0x2de   : > { %v2978_v55 = vsel %vm5942_vm7, %v2977_v45, %v2455_v44  ;;  %vm5946_vm7 = vcmask 523264  }
 0x2df   : > { %2610 = vrot.lane.b32.xlu1 %v1532_v29, %s5878_s6  ;;  %v2979_v14 = vsel %vm5943_vm9, %v2978_v55, %v4972_v12  ;;  %v5947_v12 = vld [vmem:[#allocation22_spill] sm:$0xff]  ;;  %vm5949_vm9 = vcmask 588800   ;;  %v5176_v55 = vpop.permute.xlu0 %2678  ;;  %s6183_s6 = sld [smem:[#allocation15_spill]] }
 0x2e0   : > { %v1551_v19 = vrot.slane %v5947_v12, %v3620_v10 }
 0x2e1   : > { %v2463_v21 = vpop.permute.xlu1 %2462 }
 0x2e2   : > { %v2980_v47 = vsel %vm5944_vm8, %v2979_v14, %v2463_v21  ;;  %vm5948_vm8 = vcmask 556032  }
 0x2e3   : > { %2614 = vrot.lane.b32.xlu1 %v1542_v1, %s5830_s22  ;;  %v2981_v34 = vsel %vm5945_vm10, %v2980_v47, %v4984_v59  ;;  %v1566_v59 = vrot.slane %v1551_v19, %v3623_v11  ;;  %vm5950_vm10 = vcmask 621568  }
 0x2e5   : > { %v2471_v23 = vpop.permute.xlu1 %2470  ;;  %v1589_v2 = vcombine.high %v1566_v59, %v5848_v53  ;;  %p6186_p9 = scmp.ne.s32.totalorder %s6183_s6, 0 }
 0x2e6   : > { %v2982_v58 = vsel %vm5946_vm7, %v2981_v34, %v2471_v23  ;;  %vm5951_vm7 = vcmask 654336   ;;  %v2687_v34 = vpop.permute.xlu0 %2686 }
 0x2e7   : > { %2618 = vrot.lane.b32.xlu1 %v1539_v28, %s5881_s1  ;;  %v2983_v39 = vsel %vm5948_vm8, %v2982_v58, %v4993_v15  ;;  %v1559_v15 = vcombine.high %v1551_v19, %v5848_v53  ;;  %vm5952_vm8 = vcmask 687104   ;;  %s6182_s1 = sld [smem:[#allocation18_spill]] }
 0x2e9   : > { %v2479_v13 = vpop.permute.xlu1 %2478  ;;  %v1573_v45 = vrot.slane %v1559_v15, %v3623_v11 }
 0x2ea   : > { %v2984_v49 = vsel %vm5949_vm9, %v2983_v39, %v2479_v13  ;;  %vm5953_vm9 = vcmask 719872   ;;  %v2695_v39 = vpop.permute.xlu0 %2694 }
 0x2eb   : > { %2622 = vrot.lane.b32.xlu1 %v1543_v9, %s5833_s15  ;;  %v2985_v54 = vsel %vm5950_vm10, %v2984_v49, %v5006_v24  ;;  %v1544_v24 = vcombine.high %v5947_v12, %v5848_v53  ;;  %vm5954_vm10 = vcmask 785408   ;;  %v1590_v14 = vcombine.high %v1573_v45, %v5848_v53 }
 0x2ed   : > { %v2487_v51 = vpop.permute.xlu1 %2486  ;;  %s6184_s8 = sshll.u32 %s6182_s1, 3  ;;  %s3120_s21 = scalar_lea.sflag [#allocation4], %s6182_s1 }
 0x2ee   : > { %v2986_v50 = vsel %vm5951_vm7, %v2985_v54, %v2487_v51  ;;  %vm5955_vm7 = vcmask 818176  }
 0x2ef   : > { %2626 = vrot.lane.b32.xlu1 %v1566_v59, %s5885_s24  ;;  %v2987_v31 = vsel %vm5952_vm8, %v2986_v50, %v5019_v22  ;;  %v1558_v22 = vrot.slane %v1544_v24, %v3620_v10  ;;  %vm5956_vm8 = vcmask 850944   ;;  %v2703_v50 = vpop.permute.xlu0 %2702 }
 0x2f1   : > { %v2495_v5 = vpop.permute.xlu1 %2494  ;;  %v1581_v23 = vrot.slane %v1558_v22, %v3623_v11  ;;  %v1574_v28 = vcombine.high %v1558_v22, %v5848_v53 }
 0x2f2   : > { %v2988_v27 = vsel %vm5953_vm9, %v2987_v31, %v2495_v5  ;;  %vm5957_vm9 = vcmask 883712  }
 0x2f3   : > { %2630 = vrot.lane.b32.xlu1 %v1589_v2, %s5836_s12  ;;  %v2989_v44 = vsel %vm2825_vm12, %v2988_v27, %v5032_v20  ;;  %v1591_v12 = vcombine.high %v1581_v23, %v5848_v53  ;;  %v1588_v49 = vrot.slane %v1574_v28, %v3623_v11 }
 0x2f5   : > { %v2503_v8 = vpop.permute.xlu1 %2502 }
 0x2f6   : > { %v2990_v29 = vsel %vm5954_vm10, %v2989_v44, %v2503_v8  ;;  %vm5958_vm10 = vcmask 261120  }
 0x2f7   : > { %2634 = vrot.lane.b32.xlu1 %v1573_v45, %s5845_s18  ;;  %v2991_v21 = vsel %vm5955_vm7, %v2990_v29, %v5041_v4  ;;  %vm5959_vm7 = vcmask 293888  }
 0x2f9   : > { %v2511_v17 = vpop.permute.xlu1 %2510 }
 0x2fa   : > { %v2992_v1 = vsel %vm5956_vm8, %v2991_v21, %v2511_v17  ;;  %vm5960_vm8 = vcmask 326656  }
 0x2fb   : > { %2638 = vrot.lane.b32.xlu1 %v1590_v14, %s5839_s5  ;;  %v2993_v47 = vsel %vm5957_vm9, %v2992_v1, %v5054_v18  ;;  %vm5961_vm9 = vcmask 359424  }
 0x2fd   : > { %v2519_v20 = vpop.permute.xlu1 %2518 }
 0x2fe   : > { %v2994_v10 = vsel %vm2835_vm15, %v2993_v47, %v2519_v20 }
 0x2ff   : > { %2642 = vrot.lane.b32.xlu1 %v1581_v23, %s5850_s25  ;;  %v2995_v58 = vsel %vm2837_vm11, %v2994_v10, %v5063_v46  ;;  %s3485_s25 = smov [#allocation5]  }
 0x300   : > { %s3369_s18 = sshll.u32 %s3485_s25, 4  ;;  %s3370_s18 = int_to_ptr.vmem [resolvable:$false] %s3369_s18 }
 0x301   : > { %v2527_v4 = vpop.permute.xlu1 %2526  ;;  %s3371_s27 = scalar_lea.vmem %s3370_s18, 256 }
 0x302   : > { %v2996_v19 = vsel %vm2839_vm14, %v2995_v58, %v2527_v4 }
 0x303   : > { %v5195_v18 = vsel %vm2841_vm13, %v2996_v19, %v5078_v60  ;;  %2646 = vrot.lane.b32.xlu1 %v1591_v12, %s5894_s9  ;;  %v1592_v60 = vcombine.high %v1588_v49, %v5848_v53  ;;  %s150_s9 = scalar_lea.vmem [#allocation5], %s6184_s8 }
 0x304   : > { %v3070_v13 = vcombine.low %v5085_v62, %v5195_v18  ;;  %s3136_s10 = sshll.u32 %s150_s9, 4  ;;  %s5618_s10 = int_to_ptr.vmem [resolvable:$true] %s3136_s10 }
 0x305   : > { %v2535_v9 = vpop.permute.xlu1 %2534  ;;  %s3365_s24 = scalar_lea.vmem %s5618_s10, 128  ;;  %p3372_p7 = scmp.lt.s32.totalorder %s5618_s10, %s3370_s18 }
 0x306   : > { %v2998_v46 = vsel %vm2781_vm0, %v4970_v61, %v2535_v9  ;;  %v2707_v61 = vpop.permute.xlu0 %2706  ;;  %p3366_p8 = scmp.ne.s32.totalorder %s5618_s10, %s3365_s24  ;;  %p3373_p13 = scmp.lt.s32.totalorder %s3371_s27, %s3365_s24 }
 0x307   : > { %2650 = vrot.lane.b32.xlu1 %v1588_v49, %s5854_s0  ;;  %v2999_v51 = vsel %vm2783_vm1, %v2998_v46, %v5093_v63  ;;  %s6181_s0 = sld [smem:[#allocation11_spill]] }
 0x308   : > { %p3367_p11 = pnand %p3366_p8, %p6186_p9  ;;  %p3374_p3 = por %p3373_p13, %p3372_p7 }
 0x309   : > { %v2543_v59 = vpop.permute.xlu1 %2542 }
 0x30a   : > { %v3000_v54 = vsel %vm2785_vm2, %v2999_v51, %v2543_v59  ;;  %v5218_v8 = vpop.permute.xlu0 %2710  ;;  %v2874_v59 = vsel %vm2781_vm0, %v4229_v26, %v4645_v37  ;;  %p3368_p0 = pneg %p3367_p11 }
 0x30b   : > { %2654 = vrot.lane.b32.xlu1 %v1592_v60, %s5844_s26  ;;  %v3001_v11 = vsel %vm2787_vm3, %v3000_v54, %v5102_v6  ;;  %v5963_v54 = vld [vmem:[#allocation54_spill] sm:$0xff] }
 0x30c   : > { %p3375_p6 = pnand %p3374_p3, %p3368_p0 }
 0x30d   : > { %v2551_v15 = vpop.permute.xlu1 %2550  ;;  %s3236_s7 = sshll.u32 %s6181_s0, 7 }
 0x30e   : > { %v3002_v5 = vsel %vm2789_vm4, %v3001_v11, %v2551_v15  ;;  %v5225_v29 = vpop.permute.xlu0 %2714  ;;  %v2875_v15 = vsel %vm2783_vm1, %v2874_v59, %v5963_v54  ;;  %v5964_v11 = vld [vmem:[#allocation116_spill] sm:$0xff]  ;;  %v5982_v54 = vld [vmem:[#allocation90_spill] sm:$0xff]  ;;  %s5616_s20 = scalar_lea.hbm %s6185_s19, %s3236_s7 }
 0x30f   : > { %v3003_v2 = vsel %vm2791_vm5, %v3002_v5, %v5113_v25  ;;  %v2876_v5 = vsel %vm2785_vm2, %v2875_v15, %v5964_v11  ;;  %v5979_v59 = vld [vmem:[#allocation24_spill] sm:$0xff] }
 0x311   : > { %v2559_v31 = vpop.permute.xlu1 %2558 }
 0x312   : > { %v3004_v63 = vsel %vm2793_vm6, %v3003_v2, %v2559_v31  ;;  %v5232_v14 = vpop.permute.xlu0 %2718 }
 0x313   : > { %v3005_v53 = vsel %vm5958_vm10, %v3004_v63, %v5125_v43  ;;  %v5966_v63 = vld [vmem:[#allocation56_spill] sm:$0xff] }
 0x315   : > { %v2567_v27 = vpop.permute.xlu1 %2566 }
 0x316   : > { %v3006_v24 = vsel %vm5959_vm7, %v3005_v53, %v2567_v27  ;;  %v5235_v20 = vpop.permute.xlu0 %2722  ;;  %v2877_v27 = vsel %vm2787_vm3, %v2876_v5, %v5966_v63  ;;  %v5967_v53 = vld [vmem:[#allocation117_spill] sm:$0xff]  ;;  %v5985_v5 = vld [vmem:[#allocation60_spill] sm:$0xff] }
 0x317   : > { %v3007_v6 = vsel %vm5960_vm8, %v3006_v24, %v5134_v36  ;;  %v2878_v24 = vsel %vm2789_vm4, %v2877_v27, %v5967_v53  ;;  %v5990_v63 = vld [vmem:[#allocation89_spill] sm:$0xff] }
 0x319   : > { %v2575_v44 = vpop.permute.xlu1 %2574 }
 0x31a   : > { %v5223_v45 = vsel %vm5961_vm9, %v3007_v6, %v2575_v44  ;;  %v5237_v10 = vpop.permute.xlu0 %2726 }
 0x31d   : > { %v2659_v25 = vpop.permute.xlu1 %2658 }
 0x31e   : > { %v3029_v22 = vsel %vm2781_vm0, %v5017_v57, %v2659_v25  ;;  %v5239_v4 = vpop.permute.xlu0 %2730  ;;  %v5970_v25 = vld [vmem:[#allocation23_spill] sm:$0xff] }
 0x31f   : > { %v3030_v43 = vsel %vm2783_vm1, %v3029_v22, %v5156_v3 }
 0x321   : > { %v2667_v17 = vpop.permute.xlu1 %2666 }
 0x322   : > { %v3031_v21 = vsel %vm2785_vm2, %v3030_v43, %v2667_v17  ;;  %v5254_v46 = vpop.permute.xlu0 %2734  ;;  %v5971_v43 = vld [vmem:[#allocation88_spill] sm:$0xff] }
 0x323   : > { %v3032_v1 = vsel %vm2787_vm3, %v3031_v21, %v2671_v30  ;;  %v5962_v30 = vld [vmem:[#allocation27_spill] sm:$0xff]  ;;  %v5972_v21 = vld [vmem:[#allocation81_spill] sm:$0xff] }
 0x324   : > { %v2905_v19 = vsel %vm2781_vm0, %v5962_v30, %v4392_v48 }
 0x325   : > { %v2675_v36 = vpop.permute.xlu1 %2674  ;;  %v2906_v49 = vsel %vm2783_vm1, %v2905_v19, %v4842_v38  ;;  %v5978_v19 = vld [vmem:[#allocation84_spill] sm:$0xff] }
 0x326   : > { %v3033_v3 = vsel %vm2789_vm4, %v3032_v1, %v2675_v36  ;;  %v2907_v60 = vsel %vm2785_vm2, %v2906_v49, %v4410_v33  ;;  %v5271_v31 = vpop.permute.xlu0 %2738  ;;  %v5973_v36 = vld [vmem:[#allocation58_spill] sm:$0xff] }
 0x327   : > { %v3034_v58 = vsel %vm2791_vm5, %v3033_v3, %v5176_v55  ;;  %v2908_v38 = vsel %vm2787_vm3, %v2907_v60, %v4853_v0  ;;  %v5976_v3 = vld [vmem:[#allocation118_spill] sm:$0xff] }
 0x329   : > { %v2683_v47 = vpop.permute.xlu1 %2682 }
 0x32a   : > { %v3035_v9 = vsel %vm2793_vm6, %v3034_v58, %v2683_v47 }
 0x32b   : > { %v3036_v51 = vsel %vm5958_vm10, %v3035_v9, %v2687_v34  ;;  %v5965_v34 = vld [vmem:[#allocation86_spill] sm:$0xff]  ;;  %vm5968_vm10 = vcmask 392192  }
 0x32c   : > { %v2909_v33 = vsel %vm2789_vm4, %v2908_v38, %v5965_v34  ;;  %v5984_v38 = vld [vmem:[#allocation87_spill] sm:$0xff] }
 0x32d   : > { %v2691_v23 = vpop.permute.xlu1 %2690  ;;  %v2910_v0 = vsel %vm2791_vm5, %v2909_v33, %v4861_v56  ;;  %v2879_v56 = vsel %vm2791_vm5, %v2878_v24, %v5973_v36  ;;  %v5989_v33 = vld [vmem:[#allocation25_spill] sm:$0xff]  ;;  %v5993_v24 = vld [vmem:[#allocation28_spill] sm:$0xff]  ;;  %v6001_v36 = vld [vmem:[#allocation95_spill] sm:$0xff] }
 0x32e   : > { %v3037_v48 = vsel %vm5959_vm7, %v3036_v51, %v2691_v23  ;;  %v2911_v17 = vsel %vm2793_vm6, %v2910_v0, %v5971_v43  ;;  %vm5974_vm7 = vcmask 261120   ;;  %v5299_v23 = vpop.permute.xlu0 %2742  ;;  %v2880_v58 = vsel %vm2793_vm6, %v2879_v56, %v5976_v3  ;;  %v5980_v51 = vld [vmem:[#allocation20_spill] sm:$0xff]  ;;  %v5991_v0 = vld [vmem:[#allocation119_spill] sm:$0xff] }
 0x32f   : > { %v3038_v26 = vsel %vm5960_vm8, %v3037_v48, %v2695_v39  ;;  %v5969_v39 = vld [vmem:[#allocation79_spill] sm:$0xff]  ;;  %v2912_v47 = vsel %vm5974_vm7, %v2911_v17, %v4869_v52  ;;  %vm5977_vm8 = vcmask 424960   ;;  %v2782_v60 = vsel %vm2781_vm0, %v5980_v51, %v5979_v59  ;;  %v5981_v52 = vld [vmem:[#allocation85_spill] sm:$0xff]  ;;  %v5998_v17 = vld [vmem:[#allocation92_spill] sm:$0xff] }
 0x330   : > { %v2843_v22 = vsel %vm2781_vm0, %v5970_v25, %v5969_v39  ;;  %v5994_v39 = vld [vmem:[#allocation91_spill] sm:$0xff]  ;;  %v6010_v59 = vld [vmem:[#allocation120_spill] sm:$0xff] }
 0x331   : > { %v2699_v28 = vpop.permute.xlu1 %2698  ;;  %v2844_v1 = vsel %vm2783_vm1, %v2843_v22, %v5972_v21 }
 0x332   : > { %v3039_v2 = vsel %vm5961_vm9, %v3038_v26, %v2699_v28  ;;  %vm5983_vm9 = vcmask 293888   ;;  %v5335_v22 = vpop.permute.xlu0 %2746 }
 0x333   : > { %v3040_v44 = vsel %vm5968_vm10, %v3039_v2, %v2703_v50  ;;  %v5975_v50 = vld [vmem:[#allocation83_spill] sm:$0xff]  ;;  %v2913_v15 = vsel %vm5983_vm9, %v2912_v47, %v5982_v54  ;;  %vm5986_vm10 = vmmov %vm5974_vm7  ;;  %vm5987_vm7 = vcmask 326656   ;;  %v2784_v2 = vsel %vm2783_vm1, %v2782_v60, %v5989_v33  ;;  %v6003_v47 = vld [vmem:[#allocation62_spill] sm:$0xff] }
 0x334   : > { %v2845_v28 = vsel %vm2785_vm2, %v2844_v1, %v5975_v50  ;;  %v3041_v30 = vsel %vm5977_vm8, %v3040_v44, %v2707_v61  ;;  %v2881_v61 = vsel %vm5986_vm10, %v2880_v58, %v5985_v5  ;;  %v2914_v26 = vsel %vm5987_vm7, %v2913_v15, %v4878_v42  ;;  %vm5992_vm0 = vmmov %vm5983_vm9  ;;  %v6007_v58 = vld [vmem:[#allocation26_spill] sm:$0xff]  ;;  %v6012_v60 = vld [vmem:[#allocation29_spill] sm:$0xff] }
 0x335   : > { %v5241_v57 = vpop.permute.xlu1 %2582  ;;  %v2846_v9 = vsel %vm2787_vm3, %v2845_v28, %v5978_v19  ;;  %vm5988_vm8 = vcmask 457728   ;;  %v2882_v53 = vsel %vm5992_vm0, %v2881_v61, %v5991_v0  ;;  %v2786_v44 = vsel %vm2785_vm2, %v2784_v2, %v5993_v24  ;;  %vm5995_vm9 = vmmov %vm5986_vm10  ;;  %v6005_v28 = vld [vmem:[#allocation131_spill] sm:$0xff]  ;;  %v6008_v19 = vld [vmem:[#allocation97_spill] sm:$0xff] }
 0x336   : > { %v2847_v48 = vsel %vm2789_vm4, %v2846_v9, %v5981_v52  ;;  %v3042_v34 = vsel %vm5988_vm8, %v3041_v30, %v5218_v8  ;;  %v5996_v8 = vld [vmem:[#allocation93_spill] sm:$0xff]  ;;  %vm5997_vm10 = vmmov %vm5992_vm0  ;;  %vm5999_vm1 = vcmask 359424   ;;  %vm6000_vm7 = vcmask 490496   ;;  %v6013_v52 = vld [vmem:[#allocation99_spill] sm:$0xff]  ;;  %v5375_v0 = vpop.permute.xlu0 %2750 }
 0x337   : > { %v2848_v11 = vsel %vm2791_vm5, %v2847_v48, %v5984_v38  ;;  %v2915_v21 = vsel %vm5999_vm1, %v2914_v26, %v5998_v17  ;;  %v3043_v1 = vsel %vm6000_vm7, %v3042_v34, %v5225_v29  ;;  %vm6002_vm8 = vcmask 326656   ;;  %v6016_v38 = vld [vmem:[#allocation30_spill] sm:$0xff]  ;;  %v6019_v26 = vld [vmem:[#allocation33_spill] sm:$0xff]  ;;  %v6020_v33 = vld [vmem:[#allocation64_spill] sm:$0xff] }
 0x338   : > { %v2849_v27 = vsel %vm2793_vm6, %v2848_v11, %v5990_v63  ;;  %vm6004_vm2 = vmmov %vm6002_vm8  ;;  %vm6006_vm0 = vcmask 392192   ;;  %v2788_v30 = vsel %vm2787_vm3, %v2786_v44, %v6007_v58  ;;  %vm6015_vm7 = vcmask 523264   ;;  %v6017_v5 = vld [vmem:[#allocation94_spill] sm:$0xff]  ;;  %v6022_v63 = vld [vmem:[#allocation132_spill] sm:$0xff] }
 0x339   : > { %v5246_v12 = vpop.permute.xlu1 %2586  ;;  %v2850_v25 = vsel %vm5995_vm9, %v2849_v27, %v5994_v39  ;;  %v2883_v50 = vsel %vm6004_vm2, %v2882_v53, %v6003_v47  ;;  %v2916_v3 = vsel %vm6006_vm0, %v2915_v21, %v6005_v28  ;;  %vm6009_vm9 = vmmov %vm5999_vm1  ;;  %v2790_v29 = vsel %vm2789_vm4, %v2788_v30, %v6012_v60  ;;  %v6026_v24 = vld [vmem:[#allocation121_spill] sm:$0xff]  ;;  %v6031_v17 = vld [vmem:[#allocation31_spill] sm:$0xff] }
 0x33a   : > { %v2851_v43 = vsel %vm5997_vm10, %v2850_v25, %v5996_v8  ;;  %vm6011_vm10 = vmmov %vm5999_vm1  ;;  %v3044_v54 = vsel %vm6015_vm7, %v3043_v1, %v5232_v14  ;;  %v2792_v11 = vsel %vm2791_vm5, %v2790_v29, %v6016_v38  ;;  %vm6018_vm3 = vcmask 424960   ;;  %v6024_v14 = vld [vmem:[#allocation34_spill] sm:$0xff]  ;;  %v6029_v25 = vld [vmem:[#allocation101_spill] sm:$0xff]  ;;  %v2755_v38 = vpop.permute.xlu0 %2754 }
 0x33b   : > { %v2852_v56 = vsel %vm6002_vm8, %v2851_v43, %v6001_v36  ;;  %v2884_v51 = vsel %vm6011_vm10, %v2883_v50, %v6010_v59  ;;  %vm6014_vm1 = vmmov %vm6006_vm0  ;;  %v2917_v61 = vsel %vm6018_vm3, %v2916_v3, %v6017_v5  ;;  %v2794_v34 = vsel %vm2793_vm6, %v2792_v11, %v6019_v26  ;;  %v6033_v1 = vld [vmem:[#allocation96_spill] sm:$0xff]  ;;  %v6037_v50 = vld [vmem:[#allocation66_spill] sm:$0xff] }
 0x33c   : > { %v2853_v9 = vsel %vm6009_vm9, %v2852_v56, %v6008_v19  ;;  %vm6021_vm8 = vmmov %vm6006_vm0  ;;  %vm6023_vm4 = vcmask 457728   ;;  %vm6028_vm5 = vcmask 556032   ;;  %vm6032_vm6 = vcmask 261120   ;;  %v6035_v56 = vld [vmem:[#allocation35_spill] sm:$0xff]  ;;  %v6039_v3 = vld [vmem:[#allocation133_spill] sm:$0xff] }
 0x33d   : > { %v5260_v55 = vpop.permute.xlu1 %2590  ;;  %v2854_v48 = vsel %vm6014_vm1, %v2853_v9, %v6013_v52  ;;  %v2885_v2 = vsel %vm6021_vm8, %v2884_v51, %v6020_v33  ;;  %v2918_v27 = vsel %vm6023_vm4, %v2917_v61, %v6022_v63  ;;  %vm6025_vm2 = vmmov %vm6018_vm3  ;;  %v3045_v39 = vsel %vm6028_vm5, %v3044_v54, %v5235_v20  ;;  %v6042_v30 = vld [vmem:[#allocation37_spill] sm:$0xff]  ;;  %v6044_v9 = vld [vmem:[#allocation36_spill] sm:$0xff] }
 0x33e   : > { %v2855_v53 = vsel %vm6025_vm2, %v2854_v48, %v6024_v14  ;;  %vm6027_vm0 = vmmov %vm6025_vm2  ;;  %v2796_v21 = vsel %vm6032_vm6, %v2794_v34, %v6031_v17  ;;  %vm6034_vm10 = vcmask 490496   ;;  %vm6036_vm1 = vcmask 293888   ;;  %v6046_v51 = vld [vmem:[#allocation122_spill] sm:$0xff]  ;;  %v6048_v29 = vld [vmem:[#allocation41_spill] sm:$0xff] }
 0x33f   : > { %v2886_v44 = vsel %vm6027_vm0, %v2885_v2, %v6026_v24  ;;  %vm6030_vm9 = vmmov %vm6023_vm4  ;;  %v2919_v36 = vsel %vm6034_vm10, %v2918_v27, %v6033_v1  ;;  %v2798_v47 = vsel %vm6036_vm1, %v2796_v21, %v6035_v56  ;;  %vm6040_vm3 = vcmask 523264   ;;  %v6050_v48 = vld [vmem:[#allocation103_spill] sm:$0xff]  ;;  %v6052_v5 = vld [vmem:[#allocation98_spill] sm:$0xff] }
 0x340   : > { %v2856_v8 = vsel %vm6030_vm9, %v2855_v53, %v6029_v25  ;;  %vm6038_vm7 = vmmov %vm6023_vm4  ;;  %v2920_v20 = vsel %vm6040_vm3, %v2919_v36, %v6039_v3  ;;  %vm6041_vm8 = vcmask 588800   ;;  %vm6043_vm4 = vcmask 326656   ;;  %v6055_v26 = vld [vmem:[#allocation68_spill] sm:$0xff]  ;;  %v6058_v2 = vld [vmem:[#allocation39_spill] sm:$0xff] }
 0x341   : > { %v5274_v37 = vpop.permute.xlu1 %2594  ;;  %v2887_v28 = vsel %vm6038_vm7, %v2886_v44, %v6037_v50  ;;  %v3046_v58 = vsel %vm6041_vm8, %v3045_v39, %v5237_v10  ;;  %v2800_v19 = vsel %vm6043_vm4, %v2798_v47, %v6042_v30  ;;  %vm6045_vm2 = vmmov %vm6034_vm10  ;;  %vm6049_vm5 = vcmask 359424   ;;  %v6060_v27 = vld [vmem:[#allocation38_spill] sm:$0xff]  ;;  %v6062_v53 = vld [vmem:[#allocation123_spill] sm:$0xff] }
 0x342   : > { %v2857_v59 = vsel %vm6045_vm2, %v2856_v8, %v6044_v9  ;;  %vm6047_vm0 = vmmov %vm6045_vm2  ;;  %v2802_v52 = vsel %vm6049_vm5, %v2800_v19, %v6048_v29  ;;  %vm6053_vm6 = vcmask 556032   ;;  %vm6054_vm10 = vcmask 621568   ;;  %v6064_v44 = vld [vmem:[#allocation43_spill] sm:$0xff]  ;;  %v6066_v25 = vld [vmem:[#allocation105_spill] sm:$0xff] }
 0x343   : > { %v2888_v60 = vsel %vm6047_vm0, %v2887_v28, %v6046_v51  ;;  %vm6051_vm9 = vmmov %vm6040_vm3  ;;  %v2921_v10 = vsel %vm6053_vm6, %v2920_v20, %v6052_v5  ;;  %v3047_v61 = vsel %vm6054_vm10, %v3046_v58, %v5239_v4  ;;  %vm6065_vm2 = vcmask 424960   ;;  %v6071_v1 = vld [vmem:[#allocation100_spill] sm:$0xff]  ;;  %v6073_v56 = vld [vmem:[#allocation49_spill] sm:$0xff]  ;;  %v2759_v20 = vpop.permute.xlu0 %2758 }
 0x344   : > { %v2858_v54 = vsel %vm6051_vm9, %v2857_v59, %v6050_v48  ;;  %vm6056_vm1 = vmmov %vm6040_vm3  ;;  %vm6059_vm3 = vcmask 392192   ;;  %vm6068_vm5 = vcmask 654336   ;;  %vm6070_vm9 = vcmask 457728   ;;  %v6075_v50 = vld [vmem:[#allocation70_spill] sm:$0xff]  ;;  %v6078_v58 = vld [vmem:[#allocation40_spill] sm:$0xff] }
 0x345   : > { %v5286_v6 = vpop.permute.xlu1 %2598  ;;  %v2889_v34 = vsel %vm6056_vm1, %v2888_v60, %v6055_v26  ;;  %vm6057_vm7 = vmmov %vm6041_vm8  ;;  %v2804_v63 = vsel %vm6059_vm3, %v2802_v52, %v6058_v2  ;;  %v3048_v8 = vsel %vm6068_vm5, %v3047_v61, %v5254_v46  ;;  %v6080_v30 = vld [vmem:[#allocation124_spill] sm:$0xff]  ;;  %v6083_v59 = vld [vmem:[#allocation106_spill] sm:$0xff] }
 0x346   : > { %v2922_v33 = vsel %vm6057_vm7, %v2921_v10, %v4909_v40  ;;  %vm6061_vm8 = vmmov %vm6053_vm6  ;;  %v2806_v39 = vsel %vm6065_vm2, %v2804_v63, %v6064_v44  ;;  %v6069_v40 = vld [vmem:[#allocation45_spill] sm:$0xff]  ;;  %v6085_v29 = vld [vmem:[#allocation47_spill] sm:$0xff] }
 0x347   : > { %v2859_v14 = vsel %vm6061_vm8, %v2858_v54, %v6060_v27  ;;  %vm6063_vm4 = vmmov %vm6053_vm6  ;;  %v2808_v21 = vsel %vm6070_vm9, %v2806_v39, %v6069_v40  ;;  %v6087_v48 = vld [vmem:[#allocation102_spill] sm:$0xff]  ;;  %v6089_v54 = vld [vmem:[#allocation51_spill] sm:$0xff]  ;;  %vm6090_vm9 = vcmask 556032  }
 0x348   : > { %v2890_v24 = vsel %vm6063_vm4, %v2889_v34, %v6062_v53  ;;  %vm6067_vm0 = vmmov %vm6057_vm7  ;;  %vm6082_vm4 = vcmask 687104   ;;  %v6091_v10 = vld [vmem:[#allocation72_spill] sm:$0xff]  ;;  %v6095_v34 = vld [vmem:[#allocation42_spill] sm:$0xff]  ;;  %v2763_v53 = vpop.permute.xlu0 %2762 }
 0x349   : > { %v5308_v49 = vpop.permute.xlu1 %2602  ;;  %v2860_v4 = vsel %vm6067_vm0, %v2859_v14, %v6066_v25  ;;  %vm6072_vm6 = vmmov %vm6054_vm10  ;;  %vm6074_vm10 = vcmask 490496   ;;  %v3049_v9 = vsel %vm6082_vm4, %v3048_v8, %v5271_v31  ;;  %v6097_v2 = vld [vmem:[#allocation125_spill] sm:$0xff]  ;;  %v6099_v27 = vld [vmem:[#allocation108_spill] sm:$0xff] }
 0x34a   : > { %v2923_v36 = vsel %vm6072_vm6, %v2922_v33, %v6071_v1  ;;  %v2810_v47 = vsel %vm6074_vm10, %v2808_v21, %v6073_v56  ;;  %vm6076_vm1 = vmmov %vm6067_vm0  ;;  %vm6086_vm0 = vcmask 523264   ;;  %vm6093_vm10 = vcmask 719872   ;;  %v6101_v44 = vld [vmem:[#allocation32_spill] sm:$0xff]  ;;  %v6106_v40 = vld [vmem:[#allocation74_spill] sm:$0xff] }
 0x34b   : > { %v2891_v28 = vsel %vm6076_vm1, %v2890_v24, %v6075_v50  ;;  %vm6077_vm7 = vmmov %vm6068_vm5  ;;  %v2812_v52 = vsel %vm6086_vm0, %v2810_v47, %v6085_v29  ;;  %v6103_v25 = vld [vmem:[#allocation104_spill] sm:$0xff]  ;;  %v6108_v1 = vld [vmem:[#allocation134_spill] sm:$0xff] }
 0x34c   : > { %v2924_v3 = vsel %vm6077_vm7, %v2923_v36, %v4919_v16  ;;  %vm6079_vm3 = vmmov %vm6072_vm6  ;;  %v2814_v5 = vsel %vm6090_vm9, %v2812_v52, %v6089_v54  ;;  %v6110_v56 = vld [vmem:[#allocation44_spill] sm:$0xff]  ;;  %v6111_v50 = vld [vmem:[#allocation126_spill] sm:$0xff]  ;;  %v2767_v54 = vpop.permute.xlu0 %2766 }
 0x34d   : > { %v5337_v42 = vpop.permute.xlu1 %2606  ;;  %v2861_v46 = vsel %vm6079_vm3, %v2860_v4, %v6078_v58  ;;  %vm6081_vm8 = vmmov %vm6079_vm3  ;;  %v6104_v4 = vld [vmem:[#allocation55_spill] sm:$0xff]  ;;  %v6121_v52 = vld [vmem:[#allocation76_spill] sm:$0xff] }
 0x34e   : > { %v2892_v19 = vsel %vm6081_vm8, %v2891_v28, %v6080_v30  ;;  %vm6084_vm2 = vmmov %vm6068_vm5  ;;  %v6115_v30 = vld [vmem:[#allocation53_spill] sm:$0xff] }
 0x34f   : > { %v2862_v51 = vsel %vm6084_vm2, %v2861_v46, %v6083_v59  ;;  %vm6088_vm5 = vmmov %vm6082_vm4 }
 0x350   : > { %v2925_v16 = vsel %vm6088_vm5, %v2924_v3, %v6087_v48  ;;  %vm6092_vm6 = vmmov %vm6084_vm2  ;;  %vm6105_vm2 = vcmask 621568   ;;  %vm6109_vm5 = vcmask 785408   ;;  %v6112_v3 = vld [vmem:[#allocation110_spill] sm:$0xff] }
 0x351   : > { %v5363_v15 = vpop.permute.xlu1 %2610  ;;  %v2893_v61 = vsel %vm6092_vm6, %v2892_v19, %v6091_v10  ;;  %v2926_v31 = vsel %vm6093_vm10, %v2925_v16, %v4928_v35  ;;  %vm6094_vm1 = vmmov %vm6093_vm10  ;;  %vm6116_vm10 = vcmask 654336  }
 0x352   : > { %v3050_v26 = vsel %vm6094_vm1, %v3049_v9, %v5299_v23  ;;  %vm6096_vm7 = vmmov %vm6082_vm4  ;;  %v2927_v35 = vsel %vm2825_vm12, %v2926_v31, %v6103_v25  ;;  %v6117_v9 = vld [vmem:[#allocation107_spill] sm:$0xff] }
 0x353   : > { %v2863_v33 = vsel %vm6096_vm7, %v2862_v51, %v6095_v34  ;;  %vm6098_vm3 = vmmov %vm6082_vm4  ;;  %vm6102_vm4 = vcmask 588800   ;;  %v3051_v23 = vsel %vm2825_vm12, %v3050_v26, %v5335_v22  ;;  %v2928_v36 = vsel %vm6109_vm5, %v2927_v35, %v6108_v1  ;;  %v6119_v51 = vld [vmem:[#allocation57_spill] sm:$0xff] }
 0x354   : > { %v2894_v63 = vsel %vm6098_vm3, %v2893_v61, %v6097_v2  ;;  %vm6100_vm8 = vmmov %vm6094_vm1  ;;  %v2816_v39 = vsel %vm6102_vm4, %v2814_v5, %v6101_v44  ;;  %vm6124_vm4 = vcmask 392192   ;;  %v6125_v5 = vld [vmem:[#allocation46_spill] sm:$0xff]  ;;  %v6127_v61 = vld [vmem:[#allocation127_spill] sm:$0xff] }
 0x355   : > { %v5385_v43 = vpop.permute.xlu1 %2614  ;;  %v2864_v14 = vsel %vm6100_vm8, %v2863_v33, %v6099_v27  ;;  %v2818_v8 = vsel %vm6105_vm2, %v2816_v39, %v6104_v4  ;;  %vm6107_vm0 = vmmov %vm6094_vm1  ;;  %vm6118_vm1 = vcmask 818176   ;;  %vm6123_vm8 = vcmask 850944   ;;  %v6131_v33 = vld [vmem:[#allocation59_spill] sm:$0xff]  ;;  %v6137_v44 = vld [vmem:[#allocation109_spill] sm:$0xff] }
 0x356   : > { %v2895_v21 = vsel %vm6107_vm0, %v2894_v63, %v6106_v40  ;;  %v2865_v47 = vsel %vm2825_vm12, %v2864_v14, %v6110_v56  ;;  %vm6113_vm9 = vmmov %vm6109_vm5  ;;  %v2820_v19 = vsel %vm6116_vm10, %v2818_v8, %v6115_v30  ;;  %v2929_v59 = vsel %vm6118_vm1, %v2928_v36, %v6117_v9  ;;  %v6136_v27 = vld [vmem:[#allocation63_spill] sm:$0xff]  ;;  %v6143_v4 = vld [vmem:[#allocation48_spill] sm:$0xff] }
 0x357   : > { %v2896_v28 = vsel %vm2825_vm12, %v2895_v21, %v6111_v50  ;;  %v2866_v58 = vsel %vm6113_vm9, %v2865_v47, %v6112_v3  ;;  %vm6114_vm6 = vmmov %vm6109_vm5  ;;  %v2930_v16 = vsel %vm6123_vm8, %v2929_v59, %v4943_v7  ;;  %v6133_v7 = vld [vmem:[#allocation111_spill] sm:$0xff]  ;;  %v6145_v40 = vld [vmem:[#allocation128_spill] sm:$0xff]  ;;  %v3484_v56 = vmov 1966171168  }
 0x358   : > { %v3052_v22 = vsel %vm6114_vm6, %v3051_v23, %v5375_v0  ;;  %vm6120_vm7 = vmmov %vm6098_vm3  ;;  %v3009_v0 = vsel %vm6124_vm4, %v5223_v45, %v5145_v32  ;;  %vm6132_vm6 = vcmask 719872   ;;  %vm6141_vm4 = vcmask 523264   ;;  %v6148_v1 = vld [vmem:[#allocation113_spill] sm:$0xff]  ;;  %v6152_v3 = vld [vmem:[#allocation112_spill] sm:$0xff] }
 0x359   : > { %v5409_v11 = vpop.permute.xlu1 %2618  ;;  %v2822_v29 = vsel %vm6120_vm7, %v2820_v19, %v6119_v51  ;;  %vm6122_vm3 = vmmov %vm6109_vm5  ;;  %vm6129_vm5 = vcmask 424960   ;;  %vm6138_vm7 = vcmask 883712   ;;  %v3073_v47 = vunpack.c.l.s4 %v3484_v56  ;;  %v6155_v30 = vld [vmem:[#allocation65_spill] sm:$0xff]  ;;  %v6157_v9 = vld [vmem:[#allocation80_spill] sm:$0xff] }
 0x35a   : > { %v2897_v48 = vsel %vm6122_vm3, %v2896_v28, %v6121_v52  ;;  %vm6126_vm2 = vmmov %vm6118_vm1  ;;  %v3010_v26 = vsel %vm6129_vm5, %v3009_v0, %v5241_v57  ;;  %v2824_v2 = vsel %vm6132_vm6, %v2822_v29, %v6131_v33  ;;  %v2931_v39 = vsel %vm6138_vm7, %v2930_v16, %v6137_v44  ;;  %v6158_v51 = vld [vmem:[#allocation135_spill] sm:$0xff]  ;;  %v6162_v16 = vld [vmem:[#allocation50_spill] sm:$0xff] }
 0x35b   : > { %v2867_v10 = vsel %vm6126_vm2, %v2866_v58, %v6125_v5  ;;  %vm6128_vm0 = vmmov %vm6118_vm1  ;;  %vm6135_vm1 = vcmask 457728   ;;  %v2826_v14 = vsel %vm2825_vm12, %v2824_v2, %v6136_v27  ;;  %vm6139_vm3 = vcmask 490496   ;;  %v6160_v52 = vld [vmem:[#allocation67_spill] sm:$0xff]  ;;  %v6163_v0 = vld [vmem:[#allocation129_spill] sm:$0xff] }
 0x35c   : > { %v2898_v31 = vsel %vm6128_vm0, %v2897_v48, %v6127_v61  ;;  %vm6130_vm9 = vmmov %vm6128_vm0  ;;  %v3011_v32 = vsel %vm6135_vm1, %v3010_v26, %v5246_v12  ;;  %v2932_v35 = vsel %vm2835_vm15, %v2931_v39, %v4951_v41  ;;  %v2771_v41 = vpop.permute.xlu0 %2770  ;;  %vm6149_vm6 = vcmask 588800   ;;  %v6168_v2 = vld [vmem:[#allocation71_spill] sm:$0xff]  ;;  %v6170_v27 = vld [vmem:[#allocation73_spill] sm:$0xff] }
 0x35d   : > { %v5431_v17 = vpop.permute.xlu1 %2622  ;;  %v3053_v34 = vsel %vm6130_vm9, %v3052_v22, %v2755_v38  ;;  %vm6134_vm10 = vmmov %vm6123_vm8  ;;  %v3012_v57 = vsel %vm6139_vm3, %v3011_v32, %v5260_v55  ;;  %v6140_v38 = vld [vmem:[#allocation78_spill] sm:$0xff]  ;;  %vm6147_vm9 = vcmask 556032   ;;  %v2933_v58 = vsel %vm2837_vm11, %v2932_v35, %v6152_v3  ;;  %v6180_v56 = vld [vmem:[#allocation19_spill] sm:$0xff] }
 0x35e   : > { %v2868_v63 = vsel %vm6134_vm10, %v2867_v10, %v6133_v7  ;;  %v2899_v25 = vsel %vm6123_vm8, %v2898_v31, %v6140_v38  ;;  %v3013_v23 = vsel %vm6141_vm4, %v3012_v57, %v5274_v37  ;;  %vm6142_vm2 = vmmov %vm6123_vm8  ;;  %vm6151_vm10 = vcmask 785408   ;;  %v6165_v10 = vld [vmem:[#allocation69_spill] sm:$0xff]  ;;  %v6166_v31 = vld [vmem:[#allocation115_spill] sm:$0xff] }
 0x35f   : > { %v3054_v12 = vsel %vm6142_vm2, %v3053_v34, %v2759_v20  ;;  %vm6144_vm0 = vmmov %vm6138_vm7  ;;  %v3014_v55 = vsel %vm6147_vm9, %v3013_v23, %v5286_v6  ;;  %v6150_v20 = vld [vmem:[#allocation61_spill] sm:$0xff]  ;;  %vm6153_vm1 = vcmask 621568   ;;  %vm6156_vm3 = vcmask 818176   ;;  %v6171_v39 = vld [vmem:[#allocation82_spill] sm:$0xff] }
 0x360   : > { %v2869_v8 = vsel %vm6144_vm0, %v2868_v63, %v6143_v4  ;;  %vm6146_vm5 = vmmov %vm6144_vm0  ;;  %v3015_v37 = vsel %vm6149_vm6, %v3014_v55, %v5308_v49  ;;  %v2828_v28 = vsel %vm6151_vm10, %v2826_v14, %v6150_v20  ;;  %v2934_v49 = vsel %vm2839_vm14, %v2933_v58, %v6158_v51  ;;  %v6169_v63 = vld [vmem:[#allocation114_spill] sm:$0xff]  ;;  %v6173_v38 = vld [vmem:[#allocation52_spill] sm:$0xff] }
 0x361   : > { %v5451_v60 = vpop.permute.xlu1 %2626  ;;  %v2900_v21 = vsel %vm6146_vm5, %v2899_v25, %v6145_v40  ;;  %v2870_v36 = vsel %vm2835_vm15, %v2869_v8, %v6148_v1  ;;  %v3016_v22 = vsel %vm6153_vm1, %v3015_v37, %v5337_v42  ;;  %vm6154_vm7 = vmmov %vm6144_vm0  ;;  %v2830_v19 = vsel %vm6156_vm3, %v2828_v28, %v6155_v30  ;;  %v6174_v35 = vld [vmem:[#allocation130_spill] sm:$0xff]  ;;  %v6176_v4 = vld [vmem:[#allocation75_spill] sm:$0xff] }
 0x362   : > { %v3055_v6 = vsel %vm6154_vm7, %v3054_v12, %v2763_v53  ;;  %v2901_v59 = vsel %vm2835_vm15, %v2900_v21, %v6157_v9  ;;  %vm6159_vm8 = vcmask 654336   ;;  %vm6161_vm4 = vmmov %vm6142_vm2  ;;  %v2871_v42 = vsel %vm2837_vm11, %v2870_v36, %v6162_v16 }
 0x363   : > { %v3017_v29 = vsel %vm6159_vm8, %v3016_v22, %v5363_v15  ;;  %v2832_v48 = vsel %vm6161_vm4, %v2830_v19, %v6160_v52  ;;  %v2902_v53 = vsel %vm2837_vm11, %v2901_v59, %v6163_v0  ;;  %vm6164_vm2 = vcmask 687104   ;;  %vm6172_vm9 = vmmov %vm6151_vm10 }
 0x364   : > { %v3018_v5 = vsel %vm6164_vm2, %v3017_v29, %v5385_v43  ;;  %v2834_v61 = vsel %vm6144_vm0, %v2832_v48, %v6165_v10  ;;  %v2872_v26 = vsel %vm2839_vm14, %v2871_v42, %v6166_v31  ;;  %vm6167_vm5 = vcmask 719872   ;;  %vm6175_vm6 = vmmov %vm6156_vm3 }
 0x365   : > { %v5471_v24 = vpop.permute.xlu1 %2630  ;;  %v3019_v15 = vsel %vm6167_vm5, %v3018_v5, %v5409_v11  ;;  %v3056_v33 = vsel %vm2835_vm15, %v3055_v6, %v2767_v54  ;;  %v2836_v7 = vsel %vm2835_vm15, %v2834_v61, %v6168_v2  ;;  %v2935_v32 = vsel %vm2841_vm13, %v2934_v49, %v6169_v63  ;;  %v2775_v11 = vpop.permute.xlu0 %2774  ;;  %vm6179_vm10 = vmmov %vm6144_vm0 }
 0x366   : > { %v3020_v43 = vsel %vm2825_vm12, %v3019_v15, %v5431_v17  ;;  %v2838_v14 = vsel %vm2837_vm11, %v2836_v7, %v6170_v27  ;;  %v3074_v44 = vunpack.c.0.s8 %v3073_v47  ;;  %v2903_v57 = vsel %vm2839_vm14, %v2902_v53, %v6171_v39  ;;  %vm6177_vm12 = vmmov %vm6161_vm4 }
 0x367   : > { %v3021_v54 = vsel %vm6172_vm9, %v3020_v43, %v5451_v60  ;;  %v2873_v25 = vsel %vm2841_vm13, %v2872_v26, %v6173_v38  ;;  %v2904_v23 = vsel %vm2841_vm13, %v2903_v57, %v6174_v35  ;;  %v3057_v12 = vsel %vm2837_vm11, %v3056_v33, %v2771_v41  ;;  %v6178_v60 = vld [vmem:[#allocation77_spill] sm:$0xff] }
 0x368   : > { %v3022_v17 = vsel %vm6175_vm6, %v3021_v54, %v5471_v24  ;;  %v2840_v8 = vsel %vm2839_vm14, %v2838_v14, %v6176_v4  ;;  %v3069_v40 = vcombine.low %v2904_v23, %v2935_v32  ;;  %v3077_v47 = vsub.s32 %v3074_v44, %v6180_v56 }
 0x369   : > { %v5491_v46 = vpop.permute.xlu1 %2634  ;;  %v2842_v1 = vsel %vm2841_vm13, %v2840_v8, %v6178_v60  ;;  %v3058_v41 = vsel %vm2839_vm14, %v3057_v12, %v2775_v11  ;;  %v2779_v3 = vpop.permute.xlu0 %2778 }
 0x36a   : > { %v3023_v21 = vsel %vm6177_vm12, %v3022_v17, %v5491_v46  ;;  %v3068_v37 = vcombine.low %v2842_v1, %v2873_v25  ;;  %v3085_v28 = vrot.slane %v3069_v40, %v3077_v47 }
 0x36c   : > { %v3078_v6 = vrot.slane %v3068_v37, %v3077_v47 }
 0x36d   : > { %v2639_v45 = vpop.permute.xlu1 %2638 }
 0x36e   : > { %v3024_v36 = vsel %vm6179_vm10, %v3023_v21, %v2639_v45  ;;  %v3059_v45 = vsel %vm2841_vm13, %v3058_v41, %v2779_v3  ;;  %v3100_v19 = vcombine.low %v3078_v6, %v3085_v28 }
 0x370   : > { %v3108_v51 = vrot.slane %v3100_v19, %v3077_v47 }
 0x371   : > { %v2643_v50 = vpop.permute.xlu1 %2642 }
 0x372   : > { %v3025_v24 = vsel %vm2835_vm15, %v3024_v36, %v2643_v50  ;;  %v3092_v50 = vrot.slane %v3070_v13, %v3077_v47 }
 0x375   : > { %v2647_v34 = vpop.permute.xlu1 %2646 }
 0x376   : > { %v3026_v20 = vsel %vm2837_vm11, %v3025_v24, %v2647_v34 }
 0x379   : > { %v2651_v55 = vpop.permute.xlu1 %2650 }
 0x37a   : > { %v3027_v46 = vsel %vm2839_vm14, %v3026_v20, %v2651_v55 }
 0x37d   : > { %v2655_v58 = vpop.permute.xlu1 %2654 }
 0x37e   : > { %v3028_v22 = vsel %vm2841_vm13, %v3027_v46, %v2655_v58 }
 0x37f   : > { %v3071_v30 = vcombine.low %v3028_v22, %v3059_v45 }
 0x381   : > { %v3099_v9 = vrot.slane %v3071_v30, %v3077_v47 }
 0x383   : > { %v3101_v59 = vcombine.low %v3092_v50, %v3099_v9 }
 0x385   : > { %v3115_v49 = vrot.slane %v3101_v59, %v3077_v47 }
 0x387   : > { %v3116_v29 = vcombine.low %v3108_v51, %v3115_v49 }
 0x389   : > { %3118 = vst [vmem:[%s150_s9] sm:$0xff] %v3116_v29 }
 0x38a   : > { %3378 = shalt.err (!%p3375_p6)
}
 0x38b   : > { %s3379_s29 = scalar_lea.hbm %s5616_s20, 128  ;;  %s3383_s3 = scalar_lea.hbm %s6185_s19, 256 }
 0x38c   : > { %p3380_p4 = scmp.ne.s32.totalorder %s5616_s20, %s3379_s29  ;;  %p3384_p1 = scmp.lt.u32.totalorder %s5616_s20, %s6185_s19 }
 0x38d   : > { %p3385_p2 = scmp.lt.u32.totalorder %s3383_s3, %s3379_s29  ;;  %p3387_p8 = scmp.lt.u32.totalorder %s3379_s29, %s5616_s20 }
 0x38e   : > { %p3381_p10 = pnand %p3380_p4, %p6186_p9 }
 0x38f   : > { %p3386_p5 = por %p3385_p2, %p3384_p1 }
 0x390   : > { %p3382_p12 = pneg %p3381_p10 }
 0x391   : > { %p3388_p11 = por %p3387_p8, %p3386_p5 }
 0x393   : > { %p3389_p0 = pnand %p3388_p11, %p3382_p12 }
 0x395   : > { %3392 = shalt.err (!%p3389_p0)
}
 0x396   : > { %3239 = dma.vmem_to_hbm [thread:$0]  (%p6186_p9), %s5618_s10, 128, %s5616_s20, %s3120_s21  }
 0x397 PF: > { %s6187_s12 = sld [smem:[#allocation8_spill]]  ;;  %s6188_s13 = sld [smem:[#allocation17_spill]] }
 0x398   : > { %s6189_s15 = sld [smem:[#allocation13_spill]] }
 0x39d   : > { %s3148_s16 = sand.u32 1, %s6187_s12   ;;  %p6190_p7 = scmp.ne.s32.totalorder %s6188_s13, 0 }
 0x39e   : > { %p6191_p13 = scmp.ge.s32.totalorder %s6189_s15, 2  ;;  %s3149_s17 = scalar_lea.sflag [#allocation4], %s3148_s16 }
 0x3a0   : > { %p3246_p3 = pnand %p6191_p13, %p6190_p7 }
 0x3a2   : > { %3422 = dma.done.wait (!%p3246_p3), %s3149_s17, 128  }
 0x3a3   : > { %3424 = vsyncadd (!%p3246_p3), %s3149_s17, 4294967168  ;;  %s17_s11 = sadd.s32 1, %s6189_s15   ;;  %s6192_s6 = sld [smem:[#allocation9_spill]] }
 0x3a4   : > { %p14_p6 = scmp.ge.s32.totalorder %s17_s11, 4   ;;  %s6193_s7 = sld [smem:[#allocation10_spill]] }
 0x3a5   : > { %s6194_s8 = sld [smem:[#allocation16_spill]]  ;;  %s6195_s9 = sld [smem:[#allocation12_spill]] }
 0x3a6   : > { %s6196_s10 = sld [smem:[#allocation14_spill]]  ;;  %16 = sbr.rel (!%p14_p6) target bundleno = 9 (0x9), region = 69 }
 0x3ad   :  { %3154 = vsyncpa [#allocation3], 1 }
 0x3ae   :  { %3156 = vsyncpa [#allocation3 + $0x1], 1 }
 0x3af   :  { %3157 = vsyncpa [#allocation4], 1 }
 0x3b0   :  { %3159 = vsyncpa [#allocation4 + $0x1], 1 }

</bundles_post_ra>
